<compile_context>
chip_gen: v7x
topology: tpu7x:2x2x1
jax: 0.10.0
libtpu: 0.0.40
codegen_flags: <defaults>
</compile_context>

<pallas_src>
import functools

import jax
import jax.numpy as jnp
from jax.experimental import pallas as pl
from jax.experimental.pallas import tpu as pltpu


_STATS_LANES = 128  # lane-dense per-batch stats row (unmasked vst)


def _ssi_stats_kernel(pred_ref, targ_ref, mask_ref, out_ref, *, alpha, scales):
    """Per-batch partial sums for the scale/shift-invariant loss.

    Blocks: pred/targ/mask (1, H, W) in their native dtypes (cast here),
            out (1, 1, 128) f32.

    Output lanes:
      0      : sum(mask * (pred_ssi - target)^2)   (MSE numerator)
      1      : sum(mask)                           (MSE divisor / 2)
      2 + 2k : fused grad-x + grad-y sum at stride 2^k
      3 + 2k : sum of subsampled mask at stride 2^k
    """
    p = pred_ref[0].astype(jnp.float32)     # (H, W)
    t = targ_ref[0].astype(jnp.float32)     # (H, W)
    m = mask_ref[0].astype(jnp.float32)     # (H, W)

    H, W = p.shape

    # ---- moments for the per-batch 2x2 least-squares solve ----
    # TODO(synk): plain f32 accumulation; mean-center p/t under the mask if
    # the 2x2-solve precision on very large images ever matters.
    mp = m * p
    a_00 = jnp.sum(mp * p)
    a_01 = jnp.sum(mp)
    a_11 = jnp.sum(m)
    b_0 = jnp.sum(mp * t)
    b_1 = jnp.sum(m * t)

    det = a_00 * a_11 - a_01 * a_01
    valid = det != 0.0                      # exact guard, as in PyTorch
    safe_det = jnp.where(valid, det, 1.0)
    scale = jnp.where(valid, (a_11 * b_0 - a_01 * b_1) / safe_det, 0.0)
    shift = jnp.where(valid, (-a_01 * b_0 + a_00 * b_1) / safe_det, 0.0)

    # ---- residual & masked residual (shared by MSE and gradient terms) ----
    res = scale * p + shift - t             # pred_ssi - target
    diff = m * res                          # mask * (pred_ssi - target)
    # Direct sum(mask * res^2) == sum(diff * res): numerically safe (no
    # cancellation of large moments) and exact for non-binary masks too.
    mse_num = jnp.sum(diff * res)

    stats = [(0, mse_num), (1, a_11)]

    # ---- multi-scale gradient regularizer partial sums ----
    if alpha > 0.0 and scales > 0:
        # 1-D stride selectors / boundary indices (cheap), not (H, W) iotas.
        row_idx = jax.lax.broadcasted_iota(jnp.int32, (H, 1), 0)
        col_idx = jax.lax.broadcasted_iota(jnp.int32, (1, W), 1)

        # Full-tile rotate stays vreg-aligned and runs in the XLU slot
        # (otherwise idle in this VALU-bound kernel). Only use it when the
        # tile is (8, 128)-aligned; otherwise fall back to static slices.
        use_roll = (H % 8 == 0) and (W % 128 == 0)

        for sc in range(scales):
            s = 1 << sc

            # Selection mask for the ::s, ::s subsample folded into the mask.
            if s == 1:
                m_sel = m
                m_s = a_11
            else:
                sel = jnp.logical_and((row_idx & (s - 1)) == 0,
                                      (col_idx & (s - 1)) == 0)
                m_sel = jnp.where(sel, m, 0.0)
                m_s = jnp.sum(m_sel)

            if use_roll:
                # roll by (size - s)  ==  bring element at index (i + s) to i.
                term = None
                if s < W:       # gradient along W
                    bx = (col_idx < (W - s)).astype(jnp.float32)   # (1, W)
                    dx = pltpu.roll(diff, W - s, axis=1) - diff
                    tx = (pltpu.roll(m_sel, W - s, axis=1) * bx) * jnp.abs(dx)
                    term = tx
                if s < H:       # gradient along H
                    by = (row_idx < (H - s)).astype(jnp.float32)   # (H, 1)
                    dy = pltpu.roll(diff, H - s, axis=0) - diff
                    ty = (pltpu.roll(m_sel, H - s, axis=0) * by) * jnp.abs(dy)
                    term = ty if term is None else term + ty
                # single fused reduction for grad-x + grad-y
                g = jnp.float32(0.0) if term is None else jnp.sum(m_sel * term)
            else:
                gx = jnp.float32(0.0)
                gy = jnp.float32(0.0)
                if s < W:
                    dgx = jnp.abs(diff[:, s:] - diff[:, :-s])
                    gx = jnp.sum(m_sel[:, s:] * m_sel[:, :-s] * dgx)
                if s < H:
                    dgy = jnp.abs(diff[s:, :] - diff[:-s, :])
                    gy = jnp.sum(m_sel[s:, :] * m_sel[:-s, :] * dgy)
                g = gx + gy

            stats.append((2 + 2 * sc, g))
            stats.append((3 + 2 * sc, m_s))

    # ---- single lane-dense (unmasked) store of all per-batch partials ----
    lane = jax.lax.broadcasted_iota(jnp.int32, (1, 1, _STATS_LANES), 2)
    vec = jnp.zeros((1, 1, _STATS_LANES), jnp.float32)
    for idx, val in stats:
        vec = jnp.where(lane == idx, val, vec)
    out_ref[...] = vec


def _pick_vmem_limit_bytes():
    """Generation-aware scoped-VMEM budget with headroom (v5e/v6e: ~100 MiB
    of 128; v7x: ~48 MiB of 64)."""
    try:
        cap = int(pltpu.get_tpu_info().vmem_capacity_bytes)
    except Exception:
        cap = 64 * 1024 * 1024
    return int(max(32 * 1024 * 1024,
                   min(100 * 1024 * 1024, cap - 16 * 1024 * 1024)))


def scale_and_shift_invariant_loss(prediction, target, mask, *, alpha=0.5,
                                   scales=4):
    """Pallas TPU ScaleAndShiftInvariantLoss.forward ('batch-based').

    prediction, target, mask: (B, H, W). Returns scalar float32 loss.
    """
    # TODO(synk): 'image-based' reduction variant not implemented (module
    # default is 'batch-based').
    B, H, W = prediction.shape
    assert target.shape == (B, H, W) and mask.shape == (B, H, W)

    # Inputs go straight into the kernel in their native dtypes (casts happen
    # on the VMEM tile read) -> no extra full-image HBM passes in the wrapper.
    if mask.dtype == jnp.bool_:
        mask = mask.astype(jnp.float32)     # 1-bit blocks are DMA-unfriendly

    n_stats = 2 + 2 * scales
    assert n_stats <= _STATS_LANES

    kernel = functools.partial(_ssi_stats_kernel, alpha=float(alpha),
                               scales=int(scales))

    flops = int(B * H * W * (14 + 10 * scales))
    bytes_accessed = int(B * H * W * (prediction.dtype.itemsize
                                      + target.dtype.itemsize
                                      + mask.dtype.itemsize)
                         + B * _STATS_LANES * 4)

    # TODO(synk): for >= ~720p images the whole-image-per-step block outgrows
    # VMEM; switch to a two-pass H-tiled structure (moments -> scale/shift in
    # the wrapper -> MSE+grad pass with a 2^(scales-1)-row halo).
    stats = pl.pallas_call(
        kernel,
        grid=(B,),
        in_specs=[
            pl.BlockSpec((1, H, W), lambda b: (b, 0, 0)),   # prediction
            pl.BlockSpec((1, H, W), lambda b: (b, 0, 0)),   # target
            pl.BlockSpec((1, H, W), lambda b: (b, 0, 0)),   # mask
        ],
        out_specs=pl.BlockSpec((1, 1, _STATS_LANES), lambda b: (b, 0, 0)),
        out_shape=jax.ShapeDtypeStruct((B, 1, _STATS_LANES), jnp.float32),
        compiler_params=pltpu.CompilerParams(
            dimension_semantics=("parallel",),        # megacore on v7x
            vmem_limit_bytes=_pick_vmem_limit_bytes(),
        ),
        cost_estimate=pl.CostEstimate(flops=flops, transcendentals=0,
                                      bytes_accessed=bytes_accessed),
    )(prediction, target, mask)

    stats = stats[:, 0, :]                            # (B, 128)

    # batch-based reductions (exact zero-divisor guards, as in PyTorch)
    mse_num = jnp.sum(stats[:, 0])
    m_total = jnp.sum(stats[:, 1])
    total = jnp.where(m_total == 0.0, 0.0,
                      mse_num / jnp.where(m_total == 0.0, 1.0, 2.0 * m_total))

    if alpha > 0:
        for sc in range(scales):
            g = jnp.sum(stats[:, 2 + 2 * sc])
            ms = jnp.sum(stats[:, 3 + 2 * sc])
            total = total + alpha * jnp.where(
                ms == 0.0, 0.0, g / jnp.where(ms == 0.0, 1.0, ms))
    return total


# ---------------- pure-JAX reference (for correctness check) ----------------
def _ref_loss(p, t, m, alpha=0.5, scales=4):
    a_00 = jnp.sum(m * p * p, axis=(1, 2))
    a_01 = jnp.sum(m * p, axis=(1, 2))
    a_11 = jnp.sum(m, axis=(1, 2))
    b_0 = jnp.sum(m * p * t, axis=(1, 2))
    b_1 = jnp.sum(m * t, axis=(1, 2))
    det = a_00 * a_11 - a_01 * a_01
    valid = det != 0.0
    sd = jnp.where(valid, det, 1.0)
    x_0 = jnp.where(valid, (a_11 * b_0 - a_01 * b_1) / sd, 0.0)
    x_1 = jnp.where(valid, (-a_01 * b_0 + a_00 * b_1) / sd, 0.0)
    pssi = x_0[:, None, None] * p + x_1[:, None, None]

    res = pssi - t
    num = jnp.sum(m * res * res)
    den = 2.0 * jnp.sum(m)
    total = jnp.where(den == 0.0, 0.0, num / den)

    for sc in range(scales):
        s = 2 ** sc
        ps, ts, ms = pssi[:, ::s, ::s], t[:, ::s, ::s], m[:, ::s, ::s]
        Ms = jnp.sum(ms)
        d = ms * (ps - ts)
        gx = jnp.sum(ms[:, :, 1:] * ms[:, :, :-1]
                     * jnp.abs(d[:, :, 1:] - d[:, :, :-1]))
        gy = jnp.sum(ms[:, 1:, :] * ms[:, :-1, :]
                     * jnp.abs(d[:, 1:, :] - d[:, :-1, :]))
        total = total + alpha * jnp.where(Ms == 0.0, 0.0, (gx + gy) / Ms)
    return total


if __name__ == "__main__":
    key = jax.random.PRNGKey(0)
    k1, k2, k3 = jax.random.split(key, 3)

    # Small, lane-aligned demo shape (exercises the roll fast path).
    B, H, W = 2, 16, 256
    prediction = jax.random.uniform(k1, (B, H, W), jnp.float32, 0.1, 2.0)
    target = jax.random.uniform(k2, (B, H, W), jnp.float32, 0.1, 2.0)
    mask = (jax.random.uniform(k3, (B, H, W)) > 0.3).astype(jnp.float32)

    loss_fn = jax.jit(functools.partial(scale_and_shift_invariant_loss,
                                        alpha=0.5, scales=4))
    loss = jax.block_until_ready(loss_fn(prediction, target, mask))

    ref = jax.block_until_ready(_ref_loss(prediction, target, mask))
    assert jnp.allclose(loss, ref, rtol=1e-3, atol=1e-5), (loss, ref)

    print("KERNEL_OK")
</pallas_src>

<mosaic_0001>
module attributes {stable_mosaic.version = 11 : i64} {
  func.func @_ssi_stats_kernel(%arg0: i32, %arg1: memref<1x16x256xf32, #tpu.memory_space<vmem>>, %arg2: memref<1x16x256xf32, #tpu.memory_space<vmem>>, %arg3: memref<1x16x256xf32, #tpu.memory_space<vmem>>, %arg4: memref<1x1x128xf32, #tpu.memory_space<vmem>>) attributes {dimension_semantics = [#tpu.dimension_semantics<parallel>], iteration_bounds = array<i64: 2>, scalar_prefetch = 0 : i64, scratch_operands = 0 : i64, tpu.core_type = #tpu.core_type<tc>, window_params = [{transform_indices = @transform_0, window_bounds = array<i64: 1, 16, 256>}, {transform_indices = @transform_1, window_bounds = array<i64: 1, 16, 256>}, {transform_indices = @transform_2, window_bounds = array<i64: 1, 16, 256>}, {transform_indices = @transform_3, window_bounds = array<i64: 1, 1, 128>}]} {
    %c0 = arith.constant 0 : index
    %c0_0 = arith.constant 0 : index
    %c0_1 = arith.constant 0 : index
    %0 = vector.load %arg1[%c0, %c0_0, %c0_1] : memref<1x16x256xf32, #tpu.memory_space<vmem>>, vector<1x16x256xf32>
    %1 = vector.shape_cast %0 : vector<1x16x256xf32> to vector<16x256xf32>
    %c0_2 = arith.constant 0 : index
    %c0_3 = arith.constant 0 : index
    %c0_4 = arith.constant 0 : index
    %2 = vector.load %arg2[%c0_2, %c0_3, %c0_4] : memref<1x16x256xf32, #tpu.memory_space<vmem>>, vector<1x16x256xf32>
    %3 = vector.shape_cast %2 : vector<1x16x256xf32> to vector<16x256xf32>
    %c0_5 = arith.constant 0 : index
    %c0_6 = arith.constant 0 : index
    %c0_7 = arith.constant 0 : index
    %4 = vector.load %arg3[%c0_5, %c0_6, %c0_7] : memref<1x16x256xf32, #tpu.memory_space<vmem>>, vector<1x16x256xf32>
    %5 = vector.shape_cast %4 : vector<1x16x256xf32> to vector<16x256xf32>
    %6 = arith.mulf %5, %1 : vector<16x256xf32>
    %7 = arith.mulf %6, %1 : vector<16x256xf32>
    %8 = vector.shape_cast %7 : vector<16x256xf32> to vector<1x16x256xf32>
    %cst = arith.constant dense<0.000000e+00> : vector<1xf32>
    %9 = vector.multi_reduction <add>, %8, %cst [1, 2] : vector<1x16x256xf32> to vector<1xf32>
    %10 = vector.shape_cast %9 : vector<1xf32> to vector<1x1x1xf32>
    %11 = vector.extract %10[0, 0, 0] : f32 from vector<1x1x1xf32>
    %12 = vector.shape_cast %6 : vector<16x256xf32> to vector<1x16x256xf32>
    %cst_8 = arith.constant dense<0.000000e+00> : vector<1xf32>
    %13 = vector.multi_reduction <add>, %12, %cst_8 [1, 2] : vector<1x16x256xf32> to vector<1xf32>
    %14 = vector.shape_cast %13 : vector<1xf32> to vector<1x1x1xf32>
    %15 = vector.extract %14[0, 0, 0] : f32 from vector<1x1x1xf32>
    %16 = vector.shape_cast %5 : vector<16x256xf32> to vector<1x16x256xf32>
    %cst_9 = arith.constant dense<0.000000e+00> : vector<1xf32>
    %17 = vector.multi_reduction <add>, %16, %cst_9 [1, 2] : vector<1x16x256xf32> to vector<1xf32>
    %18 = vector.shape_cast %17 : vector<1xf32> to vector<1x1x1xf32>
    %19 = vector.extract %18[0, 0, 0] : f32 from vector<1x1x1xf32>
    %20 = arith.mulf %6, %3 : vector<16x256xf32>
    %21 = vector.shape_cast %20 : vector<16x256xf32> to vector<1x16x256xf32>
    %cst_10 = arith.constant dense<0.000000e+00> : vector<1xf32>
    %22 = vector.multi_reduction <add>, %21, %cst_10 [1, 2] : vector<1x16x256xf32> to vector<1xf32>
    %23 = vector.shape_cast %22 : vector<1xf32> to vector<1x1x1xf32>
    %24 = vector.extract %23[0, 0, 0] : f32 from vector<1x1x1xf32>
    %25 = arith.mulf %5, %3 : vector<16x256xf32>
    %26 = vector.shape_cast %25 : vector<16x256xf32> to vector<1x16x256xf32>
    %cst_11 = arith.constant dense<0.000000e+00> : vector<1xf32>
    %27 = vector.multi_reduction <add>, %26, %cst_11 [1, 2] : vector<1x16x256xf32> to vector<1xf32>
    %28 = vector.shape_cast %27 : vector<1xf32> to vector<1x1x1xf32>
    %29 = vector.extract %28[0, 0, 0] : f32 from vector<1x1x1xf32>
    %30 = arith.mulf %11, %19 : f32
    %31 = arith.mulf %15, %15 : f32
    %32 = arith.subf %30, %31 : f32
    %cst_12 = arith.constant 0.000000e+00 : f32
    %33 = arith.cmpf one, %32, %cst_12 : f32
    %cst_13 = arith.constant 1.000000e+00 : f32
    %34 = arith.select %33, %32, %cst_13 : f32
    %35 = arith.mulf %19, %24 : f32
    %36 = arith.mulf %15, %29 : f32
    %37 = arith.subf %35, %36 : f32
    %38 = arith.divf %37, %34 : f32
    %cst_14 = arith.constant 0.000000e+00 : f32
    %39 = arith.select %33, %38, %cst_14 : f32
    %cst_15 = arith.constant 0.000000e+00 : f32
    %40 = arith.subf %cst_15, %15 : f32
    %41 = arith.mulf %40, %24 : f32
    %42 = arith.mulf %11, %29 : f32
    %43 = arith.addf %41, %42 : f32
    %44 = arith.divf %43, %34 : f32
    %cst_16 = arith.constant 0.000000e+00 : f32
    %45 = arith.select %33, %44, %cst_16 : f32
    %46 = vector.broadcast %39 : f32 to vector<16x256xf32>
    %47 = arith.mulf %46, %1 : vector<16x256xf32>
    %48 = vector.broadcast %45 : f32 to vector<16x256xf32>
    %49 = arith.addf %47, %48 : vector<16x256xf32>
    %50 = arith.subf %49, %3 : vector<16x256xf32>
    %51 = arith.mulf %5, %50 : vector<16x256xf32>
    %52 = arith.mulf %51, %50 : vector<16x256xf32>
    %53 = vector.shape_cast %52 : vector<16x256xf32> to vector<1x16x256xf32>
    %cst_17 = arith.constant dense<0.000000e+00> : vector<1xf32>
    %54 = vector.multi_reduction <add>, %53, %cst_17 [1, 2] : vector<1x16x256xf32> to vector<1xf32>
    %55 = vector.shape_cast %54 : vector<1xf32> to vector<1x1x1xf32>
    %56 = vector.extract %55[0, 0, 0] : f32 from vector<1x1x1xf32>
    %57 = tpu.iota {dimensions = array<i32: 0>} : vector<16x1xi32>
    %58 = tpu.iota {dimensions = array<i32: 1>} : vector<1x256xi32>
    %c255_i32 = arith.constant 255 : i32
    %59 = vector.broadcast %c255_i32 : i32 to vector<1x256xi32>
    %60 = arith.cmpi slt, %58, %59 : vector<1x256xi32>
    %61 = arith.extui %60 : vector<1x256xi1> to vector<1x256xi32>
    %62 = arith.sitofp %61 : vector<1x256xi32> to vector<1x256xf32>
    %c255_i32_18 = arith.constant 255 : i32
    %63 = tpu.dynamic_rotate %51 by %c255_i32_18 dim 1 : vector<16x256xf32>, i32 -> vector<16x256xf32>
    %64 = arith.subf %63, %51 : vector<16x256xf32>
    %c255_i32_19 = arith.constant 255 : i32
    %65 = tpu.dynamic_rotate %5 by %c255_i32_19 dim 1 : vector<16x256xf32>, i32 -> vector<16x256xf32>
    %66 = vector.broadcast %62 : vector<1x256xf32> to vector<16x256xf32>
    %67 = arith.mulf %65, %66 : vector<16x256xf32>
    %68 = math.absf %64 : vector<16x256xf32>
    %69 = arith.mulf %67, %68 : vector<16x256xf32>
    %c15_i32 = arith.constant 15 : i32
    %70 = vector.broadcast %c15_i32 : i32 to vector<16x1xi32>
    %71 = arith.cmpi slt, %57, %70 : vector<16x1xi32>
    %72 = arith.extui %71 : vector<16x1xi1> to vector<16x1xi32>
    %73 = arith.sitofp %72 : vector<16x1xi32> to vector<16x1xf32>
    %c15_i32_20 = arith.constant 15 : i32
    %74 = tpu.dynamic_rotate %51 by %c15_i32_20 dim 0 : vector<16x256xf32>, i32 -> vector<16x256xf32>
    %75 = arith.subf %74, %51 : vector<16x256xf32>
    %c15_i32_21 = arith.constant 15 : i32
    %76 = tpu.dynamic_rotate %5 by %c15_i32_21 dim 0 : vector<16x256xf32>, i32 -> vector<16x256xf32>
    %77 = vector.broadcast %73 : vector<16x1xf32> to vector<16x256xf32>
    %78 = arith.mulf %76, %77 : vector<16x256xf32>
    %79 = math.absf %75 : vector<16x256xf32>
    %80 = arith.mulf %78, %79 : vector<16x256xf32>
    %81 = arith.addf %69, %80 : vector<16x256xf32>
    %82 = arith.mulf %5, %81 : vector<16x256xf32>
    %83 = vector.shape_cast %82 : vector<16x256xf32> to vector<1x16x256xf32>
    %cst_22 = arith.constant dense<0.000000e+00> : vector<1xf32>
    %84 = vector.multi_reduction <add>, %83, %cst_22 [1, 2] : vector<1x16x256xf32> to vector<1xf32>
    %85 = vector.shape_cast %84 : vector<1xf32> to vector<1x1x1xf32>
    %86 = vector.extract %85[0, 0, 0] : f32 from vector<1x1x1xf32>
    %c1_i32 = arith.constant 1 : i32
    %87 = vector.broadcast %c1_i32 : i32 to vector<16x1xi32>
    %88 = arith.andi %57, %87 : vector<16x1xi32>
    %c0_i32 = arith.constant 0 : i32
    %89 = vector.broadcast %c0_i32 : i32 to vector<16x1xi32>
    %90 = arith.cmpi eq, %88, %89 : vector<16x1xi32>
    %c1_i32_23 = arith.constant 1 : i32
    %91 = vector.broadcast %c1_i32_23 : i32 to vector<1x256xi32>
    %92 = arith.andi %58, %91 : vector<1x256xi32>
    %c0_i32_24 = arith.constant 0 : i32
    %93 = vector.broadcast %c0_i32_24 : i32 to vector<1x256xi32>
    %94 = arith.cmpi eq, %92, %93 : vector<1x256xi32>
    %95 = vector.broadcast %90 : vector<16x1xi1> to vector<16x256xi1>
    %96 = vector.broadcast %94 : vector<1x256xi1> to vector<16x256xi1>
    %97 = arith.andi %95, %96 : vector<16x256xi1>
    %cst_25 = arith.constant 0.000000e+00 : f32
    %98 = vector.broadcast %cst_25 : f32 to vector<16x256xf32>
    %99 = arith.select %97, %5, %98 : vector<16x256xi1>, vector<16x256xf32>
    %100 = vector.shape_cast %99 : vector<16x256xf32> to vector<1x16x256xf32>
    %cst_26 = arith.constant dense<0.000000e+00> : vector<1xf32>
    %101 = vector.multi_reduction <add>, %100, %cst_26 [1, 2] : vector<1x16x256xf32> to vector<1xf32>
    %102 = vector.shape_cast %101 : vector<1xf32> to vector<1x1x1xf32>
    %103 = vector.extract %102[0, 0, 0] : f32 from vector<1x1x1xf32>
    %c254_i32 = arith.constant 254 : i32
    %104 = vector.broadcast %c254_i32 : i32 to vector<1x256xi32>
    %105 = arith.cmpi slt, %58, %104 : vector<1x256xi32>
    %106 = arith.extui %105 : vector<1x256xi1> to vector<1x256xi32>
    %107 = arith.sitofp %106 : vector<1x256xi32> to vector<1x256xf32>
    %c254_i32_27 = arith.constant 254 : i32
    %108 = tpu.dynamic_rotate %51 by %c254_i32_27 dim 1 : vector<16x256xf32>, i32 -> vector<16x256xf32>
    %109 = arith.subf %108, %51 : vector<16x256xf32>
    %c254_i32_28 = arith.constant 254 : i32
    %110 = tpu.dynamic_rotate %99 by %c254_i32_28 dim 1 : vector<16x256xf32>, i32 -> vector<16x256xf32>
    %111 = vector.broadcast %107 : vector<1x256xf32> to vector<16x256xf32>
    %112 = arith.mulf %110, %111 : vector<16x256xf32>
    %113 = math.absf %109 : vector<16x256xf32>
    %114 = arith.mulf %112, %113 : vector<16x256xf32>
    %c14_i32 = arith.constant 14 : i32
    %115 = vector.broadcast %c14_i32 : i32 to vector<16x1xi32>
    %116 = arith.cmpi slt, %57, %115 : vector<16x1xi32>
    %117 = arith.extui %116 : vector<16x1xi1> to vector<16x1xi32>
    %118 = arith.sitofp %117 : vector<16x1xi32> to vector<16x1xf32>
    %c14_i32_29 = arith.constant 14 : i32
    %119 = tpu.dynamic_rotate %51 by %c14_i32_29 dim 0 : vector<16x256xf32>, i32 -> vector<16x256xf32>
    %120 = arith.subf %119, %51 : vector<16x256xf32>
    %c14_i32_30 = arith.constant 14 : i32
    %121 = tpu.dynamic_rotate %99 by %c14_i32_30 dim 0 : vector<16x256xf32>, i32 -> vector<16x256xf32>
    %122 = vector.broadcast %118 : vector<16x1xf32> to vector<16x256xf32>
    %123 = arith.mulf %121, %122 : vector<16x256xf32>
    %124 = math.absf %120 : vector<16x256xf32>
    %125 = arith.mulf %123, %124 : vector<16x256xf32>
    %126 = arith.addf %114, %125 : vector<16x256xf32>
    %127 = arith.mulf %99, %126 : vector<16x256xf32>
    %128 = vector.shape_cast %127 : vector<16x256xf32> to vector<1x16x256xf32>
    %cst_31 = arith.constant dense<0.000000e+00> : vector<1xf32>
    %129 = vector.multi_reduction <add>, %128, %cst_31 [1, 2] : vector<1x16x256xf32> to vector<1xf32>
    %130 = vector.shape_cast %129 : vector<1xf32> to vector<1x1x1xf32>
    %131 = vector.extract %130[0, 0, 0] : f32 from vector<1x1x1xf32>
    %c3_i32 = arith.constant 3 : i32
    %132 = vector.broadcast %c3_i32 : i32 to vector<16x1xi32>
    %133 = arith.andi %57, %132 : vector<16x1xi32>
    %c0_i32_32 = arith.constant 0 : i32
    %134 = vector.broadcast %c0_i32_32 : i32 to vector<16x1xi32>
    %135 = arith.cmpi eq, %133, %134 : vector<16x1xi32>
    %c3_i32_33 = arith.constant 3 : i32
    %136 = vector.broadcast %c3_i32_33 : i32 to vector<1x256xi32>
    %137 = arith.andi %58, %136 : vector<1x256xi32>
    %c0_i32_34 = arith.constant 0 : i32
    %138 = vector.broadcast %c0_i32_34 : i32 to vector<1x256xi32>
    %139 = arith.cmpi eq, %137, %138 : vector<1x256xi32>
    %140 = vector.broadcast %135 : vector<16x1xi1> to vector<16x256xi1>
    %141 = vector.broadcast %139 : vector<1x256xi1> to vector<16x256xi1>
    %142 = arith.andi %140, %141 : vector<16x256xi1>
    %cst_35 = arith.constant 0.000000e+00 : f32
    %143 = vector.broadcast %cst_35 : f32 to vector<16x256xf32>
    %144 = arith.select %142, %5, %143 : vector<16x256xi1>, vector<16x256xf32>
    %145 = vector.shape_cast %144 : vector<16x256xf32> to vector<1x16x256xf32>
    %cst_36 = arith.constant dense<0.000000e+00> : vector<1xf32>
    %146 = vector.multi_reduction <add>, %145, %cst_36 [1, 2] : vector<1x16x256xf32> to vector<1xf32>
    %147 = vector.shape_cast %146 : vector<1xf32> to vector<1x1x1xf32>
    %148 = vector.extract %147[0, 0, 0] : f32 from vector<1x1x1xf32>
    %c252_i32 = arith.constant 252 : i32
    %149 = vector.broadcast %c252_i32 : i32 to vector<1x256xi32>
    %150 = arith.cmpi slt, %58, %149 : vector<1x256xi32>
    %151 = arith.extui %150 : vector<1x256xi1> to vector<1x256xi32>
    %152 = arith.sitofp %151 : vector<1x256xi32> to vector<1x256xf32>
    %c252_i32_37 = arith.constant 252 : i32
    %153 = tpu.dynamic_rotate %51 by %c252_i32_37 dim 1 : vector<16x256xf32>, i32 -> vector<16x256xf32>
    %154 = arith.subf %153, %51 : vector<16x256xf32>
    %c252_i32_38 = arith.constant 252 : i32
    %155 = tpu.dynamic_rotate %144 by %c252_i32_38 dim 1 : vector<16x256xf32>, i32 -> vector<16x256xf32>
    %156 = vector.broadcast %152 : vector<1x256xf32> to vector<16x256xf32>
    %157 = arith.mulf %155, %156 : vector<16x256xf32>
    %158 = math.absf %154 : vector<16x256xf32>
    %159 = arith.mulf %157, %158 : vector<16x256xf32>
    %c12_i32 = arith.constant 12 : i32
    %160 = vector.broadcast %c12_i32 : i32 to vector<16x1xi32>
    %161 = arith.cmpi slt, %57, %160 : vector<16x1xi32>
    %162 = arith.extui %161 : vector<16x1xi1> to vector<16x1xi32>
    %163 = arith.sitofp %162 : vector<16x1xi32> to vector<16x1xf32>
    %c12_i32_39 = arith.constant 12 : i32
    %164 = tpu.dynamic_rotate %51 by %c12_i32_39 dim 0 : vector<16x256xf32>, i32 -> vector<16x256xf32>
    %165 = arith.subf %164, %51 : vector<16x256xf32>
    %c12_i32_40 = arith.constant 12 : i32
    %166 = tpu.dynamic_rotate %144 by %c12_i32_40 dim 0 : vector<16x256xf32>, i32 -> vector<16x256xf32>
    %167 = vector.broadcast %163 : vector<16x1xf32> to vector<16x256xf32>
    %168 = arith.mulf %166, %167 : vector<16x256xf32>
    %169 = math.absf %165 : vector<16x256xf32>
    %170 = arith.mulf %168, %169 : vector<16x256xf32>
    %171 = arith.addf %159, %170 : vector<16x256xf32>
    %172 = arith.mulf %144, %171 : vector<16x256xf32>
    %173 = vector.shape_cast %172 : vector<16x256xf32> to vector<1x16x256xf32>
    %cst_41 = arith.constant dense<0.000000e+00> : vector<1xf32>
    %174 = vector.multi_reduction <add>, %173, %cst_41 [1, 2] : vector<1x16x256xf32> to vector<1xf32>
    %175 = vector.shape_cast %174 : vector<1xf32> to vector<1x1x1xf32>
    %176 = vector.extract %175[0, 0, 0] : f32 from vector<1x1x1xf32>
    %c7_i32 = arith.constant 7 : i32
    %177 = vector.broadcast %c7_i32 : i32 to vector<16x1xi32>
    %178 = arith.andi %57, %177 : vector<16x1xi32>
    %c0_i32_42 = arith.constant 0 : i32
    %179 = vector.broadcast %c0_i32_42 : i32 to vector<16x1xi32>
    %180 = arith.cmpi eq, %178, %179 : vector<16x1xi32>
    %c7_i32_43 = arith.constant 7 : i32
    %181 = vector.broadcast %c7_i32_43 : i32 to vector<1x256xi32>
    %182 = arith.andi %58, %181 : vector<1x256xi32>
    %c0_i32_44 = arith.constant 0 : i32
    %183 = vector.broadcast %c0_i32_44 : i32 to vector<1x256xi32>
    %184 = arith.cmpi eq, %182, %183 : vector<1x256xi32>
    %185 = vector.broadcast %180 : vector<16x1xi1> to vector<16x256xi1>
    %186 = vector.broadcast %184 : vector<1x256xi1> to vector<16x256xi1>
    %187 = arith.andi %185, %186 : vector<16x256xi1>
    %cst_45 = arith.constant 0.000000e+00 : f32
    %188 = vector.broadcast %cst_45 : f32 to vector<16x256xf32>
    %189 = arith.select %187, %5, %188 : vector<16x256xi1>, vector<16x256xf32>
    %190 = vector.shape_cast %189 : vector<16x256xf32> to vector<1x16x256xf32>
    %cst_46 = arith.constant dense<0.000000e+00> : vector<1xf32>
    %191 = vector.multi_reduction <add>, %190, %cst_46 [1, 2] : vector<1x16x256xf32> to vector<1xf32>
    %192 = vector.shape_cast %191 : vector<1xf32> to vector<1x1x1xf32>
    %193 = vector.extract %192[0, 0, 0] : f32 from vector<1x1x1xf32>
    %c248_i32 = arith.constant 248 : i32
    %194 = vector.broadcast %c248_i32 : i32 to vector<1x256xi32>
    %195 = arith.cmpi slt, %58, %194 : vector<1x256xi32>
    %196 = arith.extui %195 : vector<1x256xi1> to vector<1x256xi32>
    %197 = arith.sitofp %196 : vector<1x256xi32> to vector<1x256xf32>
    %c248_i32_47 = arith.constant 248 : i32
    %198 = tpu.dynamic_rotate %51 by %c248_i32_47 dim 1 : vector<16x256xf32>, i32 -> vector<16x256xf32>
    %199 = arith.subf %198, %51 : vector<16x256xf32>
    %c248_i32_48 = arith.constant 248 : i32
    %200 = tpu.dynamic_rotate %189 by %c248_i32_48 dim 1 : vector<16x256xf32>, i32 -> vector<16x256xf32>
    %201 = vector.broadcast %197 : vector<1x256xf32> to vector<16x256xf32>
    %202 = arith.mulf %200, %201 : vector<16x256xf32>
    %203 = math.absf %199 : vector<16x256xf32>
    %204 = arith.mulf %202, %203 : vector<16x256xf32>
    %c8_i32 = arith.constant 8 : i32
    %205 = vector.broadcast %c8_i32 : i32 to vector<16x1xi32>
    %206 = arith.cmpi slt, %57, %205 : vector<16x1xi32>
    %207 = arith.extui %206 : vector<16x1xi1> to vector<16x1xi32>
    %208 = arith.sitofp %207 : vector<16x1xi32> to vector<16x1xf32>
    %c8_i32_49 = arith.constant 8 : i32
    %209 = tpu.dynamic_rotate %51 by %c8_i32_49 dim 0 : vector<16x256xf32>, i32 -> vector<16x256xf32>
    %210 = arith.subf %209, %51 : vector<16x256xf32>
    %c8_i32_50 = arith.constant 8 : i32
    %211 = tpu.dynamic_rotate %189 by %c8_i32_50 dim 0 : vector<16x256xf32>, i32 -> vector<16x256xf32>
    %212 = vector.broadcast %208 : vector<16x1xf32> to vector<16x256xf32>
    %213 = arith.mulf %211, %212 : vector<16x256xf32>
    %214 = math.absf %210 : vector<16x256xf32>
    %215 = arith.mulf %213, %214 : vector<16x256xf32>
    %216 = arith.addf %204, %215 : vector<16x256xf32>
    %217 = arith.mulf %189, %216 : vector<16x256xf32>
    %218 = vector.shape_cast %217 : vector<16x256xf32> to vector<1x16x256xf32>
    %cst_51 = arith.constant dense<0.000000e+00> : vector<1xf32>
    %219 = vector.multi_reduction <add>, %218, %cst_51 [1, 2] : vector<1x16x256xf32> to vector<1xf32>
    %220 = vector.shape_cast %219 : vector<1xf32> to vector<1x1x1xf32>
    %221 = vector.extract %220[0, 0, 0] : f32 from vector<1x1x1xf32>
    %222 = tpu.iota {dimensions = array<i32: 2>} : vector<1x1x128xi32>
    %cst_52 = arith.constant 0.000000e+00 : f32
    %223 = vector.broadcast %cst_52 : f32 to vector<1x1x128xf32>
    %c0_i32_53 = arith.constant 0 : i32
    %224 = vector.broadcast %c0_i32_53 : i32 to vector<1x1x128xi32>
    %225 = arith.cmpi eq, %222, %224 : vector<1x1x128xi32>
    %226 = vector.broadcast %56 : f32 to vector<1x1x128xf32>
    %227 = arith.select %225, %226, %223 : vector<1x1x128xi1>, vector<1x1x128xf32>
    %c1_i32_54 = arith.constant 1 : i32
    %228 = vector.broadcast %c1_i32_54 : i32 to vector<1x1x128xi32>
    %229 = arith.cmpi eq, %222, %228 : vector<1x1x128xi32>
    %230 = vector.broadcast %19 : f32 to vector<1x1x128xf32>
    %231 = arith.select %229, %230, %227 : vector<1x1x128xi1>, vector<1x1x128xf32>
    %c2_i32 = arith.constant 2 : i32
    %232 = vector.broadcast %c2_i32 : i32 to vector<1x1x128xi32>
    %233 = arith.cmpi eq, %222, %232 : vector<1x1x128xi32>
    %234 = vector.broadcast %86 : f32 to vector<1x1x128xf32>
    %235 = arith.select %233, %234, %231 : vector<1x1x128xi1>, vector<1x1x128xf32>
    %c3_i32_55 = arith.constant 3 : i32
    %236 = vector.broadcast %c3_i32_55 : i32 to vector<1x1x128xi32>
    %237 = arith.cmpi eq, %222, %236 : vector<1x1x128xi32>
    %238 = vector.broadcast %19 : f32 to vector<1x1x128xf32>
    %239 = arith.select %237, %238, %235 : vector<1x1x128xi1>, vector<1x1x128xf32>
    %c4_i32 = arith.constant 4 : i32
    %240 = vector.broadcast %c4_i32 : i32 to vector<1x1x128xi32>
    %241 = arith.cmpi eq, %222, %240 : vector<1x1x128xi32>
    %242 = vector.broadcast %131 : f32 to vector<1x1x128xf32>
    %243 = arith.select %241, %242, %239 : vector<1x1x128xi1>, vector<1x1x128xf32>
    %c5_i32 = arith.constant 5 : i32
    %244 = vector.broadcast %c5_i32 : i32 to vector<1x1x128xi32>
    %245 = arith.cmpi eq, %222, %244 : vector<1x1x128xi32>
    %246 = vector.broadcast %103 : f32 to vector<1x1x128xf32>
    %247 = arith.select %245, %246, %243 : vector<1x1x128xi1>, vector<1x1x128xf32>
    %c6_i32 = arith.constant 6 : i32
    %248 = vector.broadcast %c6_i32 : i32 to vector<1x1x128xi32>
    %249 = arith.cmpi eq, %222, %248 : vector<1x1x128xi32>
    %250 = vector.broadcast %176 : f32 to vector<1x1x128xf32>
    %251 = arith.select %249, %250, %247 : vector<1x1x128xi1>, vector<1x1x128xf32>
    %c7_i32_56 = arith.constant 7 : i32
    %252 = vector.broadcast %c7_i32_56 : i32 to vector<1x1x128xi32>
    %253 = arith.cmpi eq, %222, %252 : vector<1x1x128xi32>
    %254 = vector.broadcast %148 : f32 to vector<1x1x128xf32>
    %255 = arith.select %253, %254, %251 : vector<1x1x128xi1>, vector<1x1x128xf32>
    %c8_i32_57 = arith.constant 8 : i32
    %256 = vector.broadcast %c8_i32_57 : i32 to vector<1x1x128xi32>
    %257 = arith.cmpi eq, %222, %256 : vector<1x1x128xi32>
    %258 = vector.broadcast %221 : f32 to vector<1x1x128xf32>
    %259 = arith.select %257, %258, %255 : vector<1x1x128xi1>, vector<1x1x128xf32>
    %c9_i32 = arith.constant 9 : i32
    %260 = vector.broadcast %c9_i32 : i32 to vector<1x1x128xi32>
    %261 = arith.cmpi eq, %222, %260 : vector<1x1x128xi32>
    %262 = vector.broadcast %193 : f32 to vector<1x1x128xf32>
    %263 = arith.select %261, %262, %259 : vector<1x1x128xi1>, vector<1x1x128xf32>
    %c0_58 = arith.constant 0 : index
    %c0_59 = arith.constant 0 : index
    %c0_60 = arith.constant 0 : index
    %264 = vector.load %arg4[%c0_58, %c0_59, %c0_60] : memref<1x1x128xf32, #tpu.memory_space<vmem>>, vector<1x1x128xf32>
    tpu.vector_store %arg4[%c0_58, %c0_59, %c0_60], %263 {strides = array<i32>} : memref<1x1x128xf32, #tpu.memory_space<vmem>>, vector<1x1x128xf32>,
    return
  }
  func.func @transform_0(%arg0: i32) -> (i32, i32, i32) {
    %c0_i32 = arith.constant 0 : i32
    %c0_i32_0 = arith.constant 0 : i32
    %c0_i32_1 = arith.constant 0 : i32
    return %arg0, %c0_i32, %c0_i32_0 : i32, i32, i32
  }
  func.func @transform_1(%arg0: i32) -> (i32, i32, i32) {
    %c0_i32 = arith.constant 0 : i32
    %c0_i32_0 = arith.constant 0 : i32
    %c0_i32_1 = arith.constant 0 : i32
    return %arg0, %c0_i32, %c0_i32_0 : i32, i32, i32
  }
  func.func @transform_2(%arg0: i32) -> (i32, i32, i32) {
    %c0_i32 = arith.constant 0 : i32
    %c0_i32_0 = arith.constant 0 : i32
    %c0_i32_1 = arith.constant 0 : i32
    return %arg0, %c0_i32, %c0_i32_0 : i32, i32, i32
  }
  func.func @transform_3(%arg0: i32) -> (i32, i32, i32) {
    %c0_i32 = arith.constant 0 : i32
    %c0_i32_0 = arith.constant 0 : i32
    %c0_i32_1 = arith.constant 0 : i32
    return %arg0, %c0_i32, %c0_i32_0 : i32, i32, i32
  }
}

</mosaic_0001>

<bundles_post_ra>
// kernel: scale_and_shift_invariant_loss.1
= control target key start
LH: loop header
LB: loop body
LE: loop exit
PB: predicated region body
PF: predicated region fallthrough
CT: control target
= control target key end

     0   :  { %8 = vsyncpa [#allocation3], 0  ;;  %s2263_s0 = inlined_call_operand.hbm [shape: f32[2,16,256], index: 0, kind: input, shape index: {}]   ;;  %s2264_s1 = inlined_call_operand.hbm [shape: f32[2,16,256], index: 1, kind: input, shape index: {}]   ;;  %s2265_s2 = inlined_call_operand.hbm [shape: f32[2,16,256], index: 2, kind: input, shape index: {}]   ;;  %s2266_s3 = inlined_call_operand.vmem [shape: f32[2,1,128], index: 3, kind: output, shape index: {}]  }
   0x1   :  { %10 = vsyncpa [#allocation3 + $0x1], 0 }
   0x2   :  { %11 = vsyncpa [#allocation5], 0 }
   0x3   :  { %13 = vsyncpa [#allocation5 + $0x1], 0  ;;  %s1335_s12 = smov 0   ;;  %s1337_s13 = smov 0  }
   0x4   :  { %s1339_s14 = smov 0   ;;  %s1341_s15 = smov 0  }
   0x5 LB: > { %s1354_s16 = sadd.s32 4294967295, %s1303_s15   ;;  %s1357_s17 = sadd.s32 1, %s1303_s15   ;;  %s1303_s15 = sphi %s1341_s15, %s2344_s15   ;;  %s1299_s14 = sphi %s1339_s14, %s2343_s14   ;;  %s1295_s13 = sphi %s1337_s13, %s2342_s13   ;;  %s1291_s12 = sphi %s1335_s12, %s2341_s12  }
   0x6   : > { %s23_s18 = ssub.s32 %s1303_s15, %s1357_s17  ;;  %s26_s19 = sadd.s32 1, %s1299_s14 }
   0x7   : > { %p24_p0 = scmp.eq.s32.totalorder %s23_s18, 0  ;;  %p33_p1 = scmp.ne.s32.totalorder %s1299_s14, %s1295_s13 }
   0x8   : > { %p34_p2 = scmp.eq.s32.totalorder %s1303_s15, 0  ;;  %p39_p3 = scmp.ne.s32.totalorder %s1295_s13, %s1291_s12 }
   0x9   : > { %s1367_s20 = scalar_select %p24_p0, %s1299_s14, %s26_s19  }
   0xa   : > { %p35_p4 = por %p34_p2, %p33_p1  ;;  %p40_p5 = scmp.eq.s32.totalorder %s1354_s16, 0 }
   0xb   : > { %p1133_p6 = scmp.lt.s32.totalorder %s1303_s15, 2  ;;  %s141_s22 = sand.u32 1, %s1299_s14  }
   0xc   : > { %p1371_p7 = por %p40_p5, %p39_p3  ;;  %s1378_s23 = sshll.u32 %s141_s22, 5 }
   0xd   : > { %s1381_s24 = sshll.u32 %s1303_s15, 9  ;;  %p1383_p8 = pnand %p1133_p6, %p35_p4 }
   0xe   : > { %s2288_s21 = scalar_select %p1371_p7, 1, 0 }
   0xf   : > { %s162_s26 = sand.u32 1, %s1303_s15   ;;  %s1392_s29 = scalar_lea.hbm %s2264_s1, %s1381_s24 }
  0x10   : > { %s166_s30 = scalar_lea.vmem [#allocation4], %s1378_s23  ;;  %s1399_s5 = scalar_lea.sflag [#allocation5], %s162_s26 }
  0x11   : > { %s173_s4 = sshll.u32 %s166_s30, 4  ;;  %s1175_s6 = scalar_lea.hbm %s1392_s29, 512  ;;  %s1396_s4 = int_to_ptr.vmem [resolvable:$true] %s173_s4 }
  0x12   : > { %p1176_p11 = scmp.ne.s32.totalorder %s1392_s29, %s1175_s6  ;;  %p1405_p12 = pneg %p1383_p8 }
  0x13   : > { %s1180_s10 = scalar_lea.hbm %s2264_s1, 1024  ;;  %p1181_p1 = scmp.lt.u32.totalorder %s1392_s29, %s2264_s1 }
  0x14   : > { %p1178_p13 = pnand %p1405_p12, %p1176_p11  ;;  %p1182_p2 = scmp.lt.u32.totalorder %s1180_s10, %s1175_s6 }
  0x15   : > { %p1184_p4 = scmp.lt.u32.totalorder %s1175_s6, %s1392_s29 }
  0x16   : > { %p1179_p0 = pneg %p1178_p13  ;;  %p1183_p3 = por %p1182_p2, %p1181_p1 }
  0x18   : > { %p1185_p5 = por %p1184_p4, %p1183_p3 }
  0x1a   : > { %p1186_p6 = pnand %p1185_p5, %p1179_p0 }
  0x1c   : > { %1189 = shalt.err (!%p1186_p6)
}
  0x1d   : > { %s1190_s18 = scalar_lea.vmem %s1396_s4, 512  ;;  %s1305_s19 = smov [#allocation4]  }
  0x1e   : > { %p1191_p11 = scmp.ne.s32.totalorder %s1396_s4, %s1190_s18  ;;  %s1195_s26 = sshll.u32 %s1305_s19, 4  ;;  %s1196_s26 = int_to_ptr.vmem [resolvable:$false] %s1195_s26 }
  0x1f   : > { %s1197_s27 = scalar_lea.vmem %s1196_s26, 1024  ;;  %p1198_p10 = scmp.lt.s32.totalorder %s1396_s4, %s1196_s26 }
  0x20   : > { %p1193_p13 = pnand %p1191_p11, %p1405_p12  ;;  %p1199_p7 = scmp.lt.s32.totalorder %s1197_s27, %s1190_s18 }
  0x22   : > { %p1194_p9 = pneg %p1193_p13  ;;  %p1200_p1 = por %p1199_p7, %p1198_p10 }
  0x24   : > { %p1201_p2 = pnand %p1200_p1, %p1194_p9 }
  0x26   : > { %1204 = shalt.err (!%p1201_p2)
}
  0x27   : > { %s1306_s28 = smov 256   ;;  %s1307_s30 = smov 16  }
  0x28   : > { %1129 = dma.hbm_to_vmem [thread:$0]  (!%p1383_p8), %s1392_s29, 512, %s1396_s4, %s1399_s5, %s1306_s28, %s1306_s28, %s1307_s30  }
  0x29   : > { %p2291_p7 = scmp.lt.s32.totalorder %s1303_s15, 3  ;;  %p2292_p9 = scmp.ge.s32.totalorder %s1303_s15, 1 }
  0x2a   : > { %s1444_s10 = scalar_lea.hbm %s2263_s0, %s1381_s24  ;;  %s145_s11 = scalar_lea.vmem [#allocation2], %s1378_s23 }
  0x2b   : > { %p1436_p10 = pnand %p2292_p9, %p2291_p7  ;;  %s152_s12 = sshll.u32 %s145_s11, 4  ;;  %s1447_s12 = int_to_ptr.vmem [resolvable:$true] %s152_s12 }
  0x2c   : > { %s1453_s15 = scalar_lea.hbm %s2265_s2, %s1381_s24  ;;  %s1457_s18 = scalar_lea.sflag [#allocation3], %s141_s22 }
  0x2d   : > { %s2293_s6 = scalar_select %p1436_p10, 1, 0 }
  0x2e   : > { %s1205_s19 = scalar_lea.hbm %s1444_s10, 512  ;;  %s1210_s8 = scalar_lea.hbm %s2263_s0, 1024 }
  0x2f   : > { %p1206_p0 = scmp.ne.s32.totalorder %s1444_s10, %s1205_s19  ;;  %p1211_p5 = scmp.lt.u32.totalorder %s1444_s10, %s2263_s0 }
  0x30   : > { %p1212_p6 = scmp.lt.u32.totalorder %s1210_s8, %s1205_s19  ;;  %p1214_p13 = scmp.lt.u32.totalorder %s1205_s19, %s1444_s10 }
  0x31   : > { %p1208_p3 = pnand %p1206_p0, %p1405_p12 }
  0x32   : > { %p1213_p11 = por %p1212_p6, %p1211_p5 }
  0x33   : > { %p1209_p4 = pneg %p1208_p3 }
  0x34   : > { %p1215_p1 = por %p1214_p13, %p1213_p11 }
  0x36   : > { %p1216_p2 = pnand %p1215_p1, %p1209_p4 }
  0x38   : > { %1219 = shalt.err (!%p1216_p2)
}
  0x39   : > { %s1220_s22 = scalar_lea.vmem %s1447_s12, 512  ;;  %s1308_s24 = smov [#allocation2]  }
  0x3a   : > { %p1221_p7 = scmp.ne.s32.totalorder %s1447_s12, %s1220_s22  ;;  %s1225_s29 = sshll.u32 %s1308_s24, 4  ;;  %s1226_s29 = int_to_ptr.vmem [resolvable:$false] %s1225_s29 }
  0x3b   : > { %s1227_s4 = scalar_lea.vmem %s1226_s29, 1024  ;;  %p1228_p3 = scmp.lt.s32.totalorder %s1447_s12, %s1226_s29 }
  0x3c   : > { %p1223_p9 = pnand %p1221_p7, %p1405_p12  ;;  %p1229_p10 = scmp.lt.s32.totalorder %s1227_s4, %s1220_s22 }
  0x3e   : > { %p1224_p0 = pneg %p1223_p9  ;;  %p1230_p5 = por %p1229_p10, %p1228_p3 }
  0x40   : > { %p1231_p6 = pnand %p1230_p5, %p1224_p0 }
  0x42   : > { %1234 = shalt.err (!%p1231_p6)
}
  0x43   : > { %1126 = dma.hbm_to_vmem [thread:$0]  (!%p1383_p8), %s1444_s10, 512, %s1447_s12, %s1457_s18, %s1306_s28, %s1306_s28, %s1307_s30  }
  0x44   : > { %s187_s19 = scalar_lea.vmem [#allocation6], %s1378_s23  ;;  %s1235_s27 = scalar_lea.hbm %s1453_s15, 512 }
  0x45   : > { %s194_s26 = sshll.u32 %s187_s19, 4  ;;  %p1236_p10 = scmp.ne.s32.totalorder %s1453_s15, %s1235_s27  ;;  %s1485_s26 = int_to_ptr.vmem [resolvable:$true] %s194_s26 }
  0x46   : > { %s1240_s11 = scalar_lea.hbm %s2265_s2, 1024  ;;  %p1241_p13 = scmp.lt.u32.totalorder %s1453_s15, %s2265_s2 }
  0x47   : > { %p1238_p4 = pnand %p1236_p10, %p1405_p12  ;;  %p1242_p1 = scmp.lt.u32.totalorder %s1240_s11, %s1235_s27 }
  0x48   : > { %p1244_p7 = scmp.lt.u32.totalorder %s1235_s27, %s1453_s15 }
  0x49   : > { %p1239_p11 = pneg %p1238_p4  ;;  %p1243_p2 = por %p1242_p1, %p1241_p13 }
  0x4b   : > { %p1245_p9 = por %p1244_p7, %p1243_p2 }
  0x4d   : > { %p1246_p0 = pnand %p1245_p9, %p1239_p11 }
  0x4f   : > { %1249 = shalt.err (!%p1246_p0)
}
  0x50   : > { %s1250_s23 = scalar_lea.vmem %s1485_s26, 512  ;;  %s1309_s10 = smov [#allocation6]  }
  0x51   : > { %p1251_p3 = scmp.ne.s32.totalorder %s1485_s26, %s1250_s23  ;;  %s1255_s12 = sshll.u32 %s1309_s10, 4  ;;  %s1256_s12 = int_to_ptr.vmem [resolvable:$false] %s1255_s12 }
  0x52   : > { %s1257_s18 = scalar_lea.vmem %s1256_s12, 1024  ;;  %p1258_p10 = scmp.lt.s32.totalorder %s1485_s26, %s1256_s12 }
  0x53   : > { %p1253_p5 = pnand %p1251_p3, %p1405_p12  ;;  %p1259_p4 = scmp.lt.s32.totalorder %s1257_s18, %s1250_s23 }
  0x55   : > { %p1254_p6 = pneg %p1253_p5  ;;  %p1260_p13 = por %p1259_p4, %p1258_p10 }
  0x57   : > { %p1261_p1 = pnand %p1260_p13, %p1254_p6 }
  0x59   : > { %1264 = shalt.err (!%p1261_p1)
}
  0x5a   : > { %1132 = dma.hbm_to_vmem [thread:$0]  (!%p1383_p8), %s1453_s15, 512, %s1485_s26, %s1399_s5, %s1306_s28, %s1306_s28, %s1307_s30  }
  0x5b   : > { %p2294_p12 = scmp.ne.s32.totalorder %s2293_s6, 0 }
  0x5d   : > { %206 = sbr.rel (%p2294_p12) target bundleno = 780 (0x30c), region = 32 }
  0x64   : > { %s208_s7 = sand.u32 1, %s1295_s13   ;;  %p2295_p11 = scmp.ne.s32.totalorder %s2288_s21, 0 }
  0x65   : > { %s1074_s29 = sshll.u32 %s208_s7, 5  ;;  %s209_s4 = scalar_lea.sflag [#allocation3], %s208_s7 }
  0x66   : > { %s212_s19 = scalar_lea.vmem [#allocation2], %s1074_s29 }
  0x67   : > { %1282 = dma.done.wait (%p2295_p11), %s209_s4, 512  }
  0x68   : > { %1284 = vsyncadd (%p2295_p11), %s209_s4, 4294966784  ;;  %s217_s25 = sand.u32 1, %s1354_s16   ;;  %s221_s8 = scalar_lea.vmem [#allocation4], %s1074_s29 }
  0x69   : > { %s218_s27 = scalar_lea.sflag [#allocation5], %s217_s25 }
  0x6a   : > { %1286 = dma.done.wait (%p2295_p11), %s218_s27, 1024  }
  0x6b   : > { %1288 = vsyncadd (%p2295_p11), %s218_s27, 4294966272  ;;  %s230_s5 = scalar_lea.vmem [#allocation6], %s1074_s29  ;;  %v1534_v5 = vld [vmem:[%s212_s19] sm:$0xff]  ;;  %v1536_v6 = vld [vmem:[%s212_s19 + $0x8] sm:$0xff]  ;;  %v408_v43 = vlaneseq  ;;  %s1310_s21 = smov 127  }
  0x6c   : > { %v1524_v0 = vld [vmem:[%s230_s5] sm:$0xff]  ;;  %v1526_v1 = vld [vmem:[%s230_s5 + $0x8] sm:$0xff]  ;;  %v1528_v2 = vld [vmem:[%s230_s5 + $0x10] sm:$0xff]  ;;  %s1311_s28 = smov 126   ;;  %s1312_s30 = smov 124  }
  0x6d   : > { %v1530_v3 = vld [vmem:[%s230_s5 + $0x18] sm:$0xff]  ;;  %v308_v4 = vadd.f32 %v1526_v1, %v1524_v0  ;;  %v1538_v7 = vld [vmem:[%s212_s19 + $0x10] sm:$0xff]  ;;  %v276_v9 = vmul.f32 %v1524_v0, %v1534_v5  ;;  %v277_v10 = vmul.f32 %v1526_v1, %v1536_v6  ;;  %v1546_v11 = vld [vmem:[%s221_s8] sm:$0xff]  ;;  %v1580_v44 = vshrl.u32 %v408_v43, 7  ;;  %s2268_s6 = smov 120   ;;  %p261_p2 = scmp.lt.s32.totalorder %s1354_s16, 1 }
  0x6e   : > { %v1540_v8 = vld [vmem:[%s212_s19 + $0x18] sm:$0xff]  ;;  %v278_v13 = vmul.f32 %v1528_v2, %v1538_v7  ;;  %v1553_v15 = vld [vmem:[%s221_s8 + $0x8] sm:$0xff]  ;;  %v1555_v16 = vld [vmem:[%s221_s8 + $0x10] sm:$0xff]  ;;  %v336_v18 = vmul.f32 %v1524_v0, %v1546_v11  ;;  %v1582_v45 = vand.u32 127, %v408_v43  ;;  %v480_v58 = vrot.slane %v1524_v0, 1 }
  0x6f   : > { %v309_v12 = vadd.f32 %v308_v4, %v1528_v2  ;;  %v279_v14 = vmul.f32 %v1530_v3, %v1540_v8  ;;  %v1557_v17 = vld [vmem:[%s221_s8 + $0x18] sm:$0xff]  ;;  %v280_v19 = vmul.f32 %v276_v9, %v1534_v5  ;;  %v281_v20 = vmul.f32 %v277_v10, %v1536_v6  ;;  %s2350_s16 = smov (!%p261_p2, %s1354_s16), 1 }
  0x70   : > { %v320_v21 = vmul.f32 %v276_v9, %v1546_v11  ;;  %v321_v22 = vmul.f32 %v277_v10, %v1553_v15  ;;  %v282_v24 = vmul.f32 %v278_v13, %v1538_v7  ;;  %v322_v26 = vmul.f32 %v278_v13, %v1555_v16 }
  0x71   : > { %v310_v23 = vadd.f32 %v309_v12, %v1530_v3  ;;  %v283_v25 = vmul.f32 %v279_v14, %v1540_v8  ;;  %v284_v27 = vadd.f32 %v281_v20, %v280_v19  ;;  %v323_v28 = vmul.f32 %v279_v14, %v1557_v17 }
  0x72   : > { %v324_v29 = vadd.f32 %v321_v22, %v320_v21  ;;  %v296_v30 = vadd.f32 %v277_v10, %v276_v9  ;;  %v337_v31 = vmul.f32 %v1526_v1, %v1553_v15  ;;  %v338_v35 = vmul.f32 %v1528_v2, %v1555_v16 }
  0x73   : > { %311 = vadd.xlane.f32.xlu1 %v310_v23  ;;  %v285_v32 = vadd.f32 %v284_v27, %v282_v24  ;;  %v339_v40 = vmul.f32 %v1530_v3, %v1557_v17  ;;  %v520_v46 = vand.u32 1, %v1580_v44  ;;  %v524_v47 = vand.u32 1, %v1582_v45 }
  0x74   : > { %v325_v33 = vadd.f32 %v324_v29, %v322_v26  ;;  %v297_v34 = vadd.f32 %v296_v30, %v278_v13  ;;  %v340_v36 = vadd.f32 %v337_v31, %v336_v18  ;;  %v1587_v48 = vadd.s32 128, %v1582_v45 }
  0x75   : > { %v286_v37 = vadd.f32 %v285_v32, %v283_v25  ;;  %v662_v49 = vand.u32 3, %v1580_v44  ;;  %v666_v50 = vand.u32 3, %v1582_v45  ;;  %vm522_vm0 = vcmp.eq.s32.totalorder %v520_v46, 0 }
  0x76   : > { %v326_v38 = vadd.f32 %v325_v33, %v323_v28  ;;  %v298_v39 = vadd.f32 %v297_v34, %v279_v14  ;;  %v341_v41 = vadd.f32 %v340_v36, %v338_v35  ;;  %vm1591_vm1 = vcmp.eq.s32.totalorder %v524_v47, 0 }
  0x77   : > { %287 = vadd.xlane.f32.xlu0 %v286_v37  ;;  %v525_v52 = vand.u32 1, %v1587_v48  ;;  %vm536_vm2 = vmand %vm522_vm0, %vm1591_vm1  ;;  %v667_v53 = vand.u32 3, %v1587_v48  ;;  %vm664_vm4 = vcmp.eq.s32.totalorder %v662_v49, 0  ;;  %vm1606_vm5 = vcmp.eq.s32.totalorder %v666_v50, 0 }
  0x78   : > { %327 = vadd.xlane.f32.xlu1 %v326_v38  ;;  %v342_v42 = vadd.f32 %v341_v41, %v339_v40  ;;  %v1600_v54 = vsel %vm536_vm2, %v1524_v0, 0.0  ;;  %vm678_vm8 = vmand %vm664_vm4, %vm1606_vm5  ;;  %v1642_v26 = vadd.s32 8, %v1580_v44  ;;  %v804_v40 = vand.u32 7, %v1580_v44 }
  0x79   : > { %vm1602_vm3 = vcmp.eq.s32.totalorder %v525_v52, 0  ;;  %vm1617_vm7 = vcmp.eq.s32.totalorder %v667_v53, 0  ;;  %v1630_v59 = vsel %vm678_vm8, %v1524_v0, 0.0  ;;  %v808_v41 = vand.u32 7, %v1582_v45 }
  0x7a   : > { %vm537_vm6 = vmand %vm522_vm0, %vm1602_vm3  ;;  %v521_v33 = vand.u32 1, %v1642_v26  ;;  %v809_v46 = vand.u32 7, %v1587_v48  ;;  %vm1660_vm13 = vcmp.eq.s32.totalorder %v804_v40, 0  ;;  %v622_v56 = vrot.slane %v1600_v54, 2 }
  0x7b   : > { %299 = vadd.xlane.f32.xlu0 %v298_v39  ;;  %v1615_v57 = vsel %vm537_vm6, %v1526_v1, 0.0  ;;  %vm679_vm9 = vmand %vm664_vm4, %vm1617_vm7  ;;  %vm1666_vm14 = vcmp.eq.s32.totalorder %v808_v41, 0 }
  0x7c   : > { %v1635_v60 = vsel %vm679_vm9, %v1526_v1, 0.0  ;;  %vm523_vm10 = vcmp.eq.s32.totalorder %v521_v33, 0  ;;  %vm1670_vm15 = vcmp.eq.s32.totalorder %v809_v46, 0  ;;  %vm820_vm0 = vmand %vm1660_vm13, %vm1666_vm14  ;;  %vm462_vm9 = vcmp.lt.s32.totalorder %v1642_v26, 15 }
  0x7d   : > { %vm538_vm11 = vmand %vm523_vm10, %vm1591_vm1  ;;  %v483_v33 = vrot.slane %v1530_v3, 1  ;;  %v544_v55 = vadd.f32 %v1615_v57, %v1600_v54 }
  0x7e   : > { %v1650_v43 = vsel %vm538_vm11, %v1528_v2, 0.0  ;;  %vm539_vm12 = vmand %vm523_vm10, %vm1602_vm3  ;;  %vm471_vm10 = vcmp.lt.s32.totalorder %v1580_v44, 7  ;;  %vm604_vm11 = vcmp.lt.s32.totalorder %v1642_v26, 14 }
  0x7f   : > { %343 = vadd.xlane.f32.xlu0 %v342_v42  ;;  %v1658_v50 = vsel %vm539_vm12, %v1530_v3, 0.0  ;;  %vm821_vm1 = vmand %vm1660_vm13, %vm1670_vm15  ;;  %vm755_vm12 = vcmp.lt.s32.totalorder %v1580_v44, 4  ;;  %vm746_vm13 = vcmp.lt.s32.totalorder %v1642_v26, 12 }
  0x89   : > { %437 = vrot.lane.b32.xlu1 %v1524_v0, %s1310_s21 }
  0x8d   : > { %579 = vrot.lane.b32.xlu1 %v1600_v54, %s1311_s28 }
  0x91   : > { %439 = vrot.lane.b32.xlu1 %v1528_v2, %s1310_s21 }
  0x95   : > { %441 = vrot.lane.b32.xlu0 %v1526_v1, %s1310_s21  ;;  %721 = vrot.lane.b32.xlu1 %v1630_v59, %s1312_s30 }
  0x99   : > { %583 = vrot.lane.b32.xlu0 %v1615_v57, %s1311_s28  ;;  %581 = vrot.lane.b32.xlu1 %v1650_v43, %s1311_s28 }
  0x9d   : > { %443 = vrot.lane.b32.xlu0 %v1530_v3, %s1310_s21 }
  0xa1   : > { %725 = vrot.lane.b32.xlu0 %v1635_v60, %s1312_s30 }
  0xa5   : > { %585 = vrot.lane.b32.xlu0 %v1658_v50, %s1311_s28 }
 0x100   : > { %v312_v61 = vpop.xlane.xlu1 %311 }
 0x101   : > { %v313_v62 = vrot.slane %v312_v61, 4 }
 0x103   : > { %v314_v63 = vadd.f32 %v313_v62, %v312_v61  ;;  %v663_v62 = vand.u32 3, %v1642_v26 }
 0x104   : > { %v288_v4 = vpop.xlane.xlu0 %287 }
 0x105   : > { %v328_v9 = vpop.xlane.xlu1 %327  ;;  %v289_v10 = vrot.slane %v288_v4, 4  ;;  %v315_v18 = vrot.slane %v314_v63, 2  ;;  %vm665_vm2 = vcmp.eq.s32.totalorder %v663_v62, 0 }
 0x106   : > { %v329_v12 = vrot.slane %v328_v9, 4  ;;  %vm680_vm3 = vmand %vm665_vm2, %vm1606_vm5 }
 0x107   : > { %v290_v13 = vadd.f32 %v289_v10, %v288_v4  ;;  %v316_v28 = vadd.f32 %v315_v18, %v314_v63  ;;  %v1680_v63 = vsel %vm820_vm0, %v1524_v0, 0.0  ;;  %v1696_v10 = vsel %vm680_vm3, %v1528_v2, 0.0  ;;  %vm681_vm4 = vmand %vm665_vm2, %vm1617_vm7 }
 0x108   : > { %v330_v14 = vadd.f32 %v329_v12, %v328_v9  ;;  %v300_v19 = vpop.xlane.xlu0 %299  ;;  %2310 = vst [vmem:[#allocation9_spill] sm:$0xff] %v1680_v63  ;;  %863 = vrot.lane.b32.xlu1 %v1680_v63, %s2268_s6  ;;  %v1689_v9 = vsel %vm821_vm1, %v1526_v1, 0.0  ;;  %2312 = vst [vmem:[#allocation11_spill] sm:$0xff] %v1696_v10  ;;  %v1703_v12 = vsel %vm681_vm4, %v1530_v3, 0.0  ;;  %vm613_vm7 = vcmp.lt.s32.totalorder %v1580_v44, 6 }
 0x109   : > { %v291_v20 = vrot.slane %v290_v13, 2  ;;  %v301_v22 = vrot.slane %v300_v19, 4  ;;  %v317_v37 = vrot.slane %v316_v28, 1  ;;  %2311 = vst [vmem:[#allocation10_spill] sm:$0xff] %v1689_v9  ;;  %867 = vrot.lane.b32.xlu0 %v1689_v9, %s2268_s6  ;;  %2313 = vst [vmem:[#allocation12_spill] sm:$0xff] %v1703_v12  ;;  %v828_v53 = vadd.f32 %v1689_v9, %v1680_v63 }
 0x10a   : > { %v331_v21 = vrot.slane %v330_v14, 2  ;;  %vm557_vm0 = vcmp.lt.s32.totalorder %v1587_v48, 254  ;;  %vm570_vm1 = vcmp.lt.s32.totalorder %v1582_v45, 126  ;;  %vm699_vm2 = vcmp.lt.s32.totalorder %v1587_v48, 252 }
 0x10b   : > { %v302_v23 = vadd.f32 %v301_v22, %v300_v19  ;;  %v292_v24 = vadd.f32 %v291_v20, %v290_v13  ;;  %v318_v52 = vadd.f32 %v317_v37, %v316_v28  ;;  %v805_v13 = vand.u32 7, %v1642_v26 }
 0x10c   : > { %v332_v25 = vadd.f32 %v331_v21, %v330_v14  ;;  %v344_v27 = vpop.xlane.xlu0 %343  ;;  %723 = vrot.lane.b32.xlu1 %v1696_v10, %s1312_s30  ;;  %v624_v14 = vrot.slane %v1650_v43, 2  ;;  %v482_v20 = vrot.slane %v1528_v2, 1  ;;  %v1314_v21 = vmov 0.0  }
 0x10d   : > { %v303_v29 = vrot.slane %v302_v23, 2  ;;  %v345_v30 = vrot.slane %v344_v27, 4  ;;  %v293_v31 = vrot.slane %v292_v24, 1  ;;  %727 = vrot.lane.b32.xlu0 %v1703_v12, %s1312_s30  ;;  %vm1710_vm5 = vcmp.eq.s32.totalorder %v805_v13, 0 }
 0x10e   : > { %v333_v32 = vrot.slane %v332_v25, 1  ;;  %vm823_vm6 = vmand %vm1710_vm5, %vm1670_vm15  ;;  %v628_v19 = vsel %vm613_vm7, %v624_v14, %v622_v56  ;;  %v1078_v22 = vsel %vm462_vm9, 1.0, %v1314_v21  ;;  %v764_v28 = vrot.slane %v1630_v59, 4 }
 0x10f   : > { %v346_v34 = vadd.f32 %v345_v30, %v344_v27  ;;  %v294_v35 = vadd.f32 %v293_v31, %v292_v24  ;;  %v304_v36 = vadd.f32 %v303_v29, %v302_v23  ;;  %vm822_vm8 = vmand %vm1710_vm5, %vm1666_vm14  ;;  %v486_v23 = vsel %vm471_vm10, %v482_v20, %v480_v58 }
 0x110   : > { %v334_v42 = vadd.f32 %v333_v32, %v332_v25  ;;  %v1080_v24 = vsel %vm604_vm11, 1.0, %v1314_v21  ;;  %v1742_v25 = vmul.f32 %v1078_v22, %v486_v23  ;;  %v766_v29 = vrot.slane %v1696_v10, 4 }
 0x111   : > { %v347_v38 = vrot.slane %v346_v34, 2  ;;  %1089 = vpush %v294_v35  ;;  %v305_v39 = vrot.slane %v304_v36, 1  ;;  %v1744_v27 = vmul.f32 %v1080_v24, %v628_v19  ;;  %v623_v30 = vrot.slane %v1615_v57, 2 }
 0x112   : > { %v625_v31 = vrot.slane %v1658_v50, 2  ;;  %v481_v32 = vrot.slane %v1526_v1, 1  ;;  %v2278_v35 = vrot.slane %v1635_v60, 4  ;;  %v1082_v37 = vsel %vm746_vm13, 1.0, %v1314_v21 }
 0x113   : > { %v306_v47 = vadd.f32 %v305_v39, %v304_v36  ;;  %v348_v49 = vadd.f32 %v347_v38, %v346_v34  ;;  %v770_v34 = vsel %vm755_vm12, %v766_v29, %v764_v28  ;;  %v2279_v36 = vrot.slane %v1703_v12, 4 }
 0x114   : > { %v487_v38 = vsel %vm471_vm10, %v483_v33, %v481_v32  ;;  %v629_v39 = vsel %vm613_vm7, %v625_v31, %v623_v30  ;;  %v1775_v40 = vmul.f32 %v1082_v37, %v770_v34  ;;  %vm415_vm14 = vcmp.lt.s32.totalorder %v1587_v48, 255 }
 0x115   : > { %1091 = vpush %v306_v47  ;;  %v349_v61 = vrot.slane %v348_v49, 1  ;;  %v1777_v41 = vmul.f32 %v1078_v22, %v487_v38  ;;  %v1779_v26 = vmul.f32 %v1080_v24, %v629_v39  ;;  %vm428_vm15 = vcmp.lt.s32.totalorder %v1582_v45, 127 }
 0x116   : > { %1093 = vpush %v318_v52  ;;  %vm841_vm3 = vcmp.lt.s32.totalorder %v1587_v48, 248  ;;  %vm712_vm4 = vcmp.lt.s32.totalorder %v1582_v45, 124  ;;  %vm854_vm5 = vcmp.lt.s32.totalorder %v1582_v45, 120  ;;  %vm938_vm9 = vcmp.eq.s32.totalorder %v1582_v45, 3 }
 0x117   : > { %1095 = vpush %v334_v42  ;;  %v350_v4 = vadd.f32 %v349_v61, %v348_v49  ;;  %v771_v42 = vsel %vm755_vm12, %v2279_v36, %v2278_v35  ;;  %v1077_v35 = vsel %vm415_vm14, 1.0, %v1314_v21  ;;  %vm943_vm11 = vcmp.eq.s32.totalorder %v1582_v45, 5 }
 0x118   : > { %v1787_v46 = vmul.f32 %v1082_v37, %v771_v42  ;;  %vm949_vm13 = vcmp.eq.s32.totalorder %v1582_v45, 7  ;;  %vm952_vm14 = vcmp.eq.s32.totalorder %v1582_v45, 8 }
 0x119   : > { %1097 = vpush %v350_v4 }
 0x142   : > { %s1090_s15 = spop %1089 }
 0x146   : > { %s1092_s26 = spop %1091 }
 0x147   : > { %s353_s9 = smul.f32 %s1092_s26, %s1092_s26  ;;  %s1789_s11 = spop %1093 }
 0x148   : > { %s352_s22 = smul.f32 %s1789_s11, %s1090_s15  ;;  %s1096_s24 = spop %1095 }
 0x149   : > { %s365_s23 = ssub.f32 0.0, %s1092_s26  ;;  %s357_s18 = smul.f32 %s1096_s24, %s1789_s11 }
 0x14a   : > { %s1098_s10 = spop %1097  ;;  %s354_s12 = ssub.f32 %s352_s22, %s353_s9 }
 0x14b   : > { %s358_s7 = smul.f32 %s1098_s10, %s1092_s26 }
 0x14c   : > { %p355_p8 = scmp.ne.f32.partialorder %s354_s12, 0.0  ;;  %s367_s29 = smul.f32 %s1098_s10, %s1090_s15 }
 0x14d   : > { %s366_s4 = smul.f32 %s1096_s24, %s365_s23  ;;  %s359_s19 = ssub.f32 %s357_s18, %s358_s7 }
 0x14e   : > { %s356_s25 = scalar_select %p355_p8, %s354_s12, 1.0 }
 0x14f   : > { %s368_s27 = sadd.f32 %s367_s29, %s366_s4  ;;  %s263_s10 = scalar_lea.vmem %s2266_s3, %s2350_s16 }
 0x150   : > { %v360_v47 = vstv %s356_s25 }
 0x151   : > { %1173 = vrcp.f32 %v360_v47 }
 0x15b   : > { %v1174_v49 = vpop.eup %1173 }
 0x15c   : > { %1099 = vpush %v1174_v49 }
 0x18d   : > { %s1100_s8 = spop %1099 }
 0x18e   : > { %s363_s5 = smul.f32 %s1100_s8, %s359_s19 }
 0x18f   : > { %s372_s6 = smul.f32 %s1100_s8, %s368_s27 }
 0x190   : > { %s2346_s5 = smov (!%p355_p8, %s363_s5), 0.0 }
 0x191   : > { %s2348_s6 = smov (!%p355_p8, %s372_s6), 0.0  ;;  %v374_v51 = vstv %s2346_s5 }
 0x192   : > { %v375_v52 = vmul.f32 %v374_v51, %v1534_v5  ;;  %v376_v61 = vmul.f32 %v374_v51, %v1536_v6  ;;  %v377_v62 = vmul.f32 %v374_v51, %v1538_v7  ;;  %v378_v4 = vmul.f32 %v374_v51, %v1540_v8 }
 0x193   : > { %v379_v13 = vstv %s2348_s6 }
 0x194   : > { %v380_v19 = vadd.f32 %v379_v13, %v375_v52  ;;  %v381_v22 = vadd.f32 %v379_v13, %v376_v61  ;;  %v382_v23 = vadd.f32 %v379_v13, %v377_v62  ;;  %v383_v24 = vadd.f32 %v379_v13, %v378_v4 }
 0x196   : > { %v384_v34 = vsub.f32 %v380_v19, %v1546_v11  ;;  %v385_v37 = vsub.f32 %v381_v22, %v1553_v15  ;;  %v386_v38 = vsub.f32 %v382_v23, %v1555_v16  ;;  %v387_v39 = vsub.f32 %v383_v24, %v1557_v17 }
 0x198   : > { %v1805_v5 = vmul.f32 %v384_v34, %v1524_v0  ;;  %v1808_v6 = vmul.f32 %v385_v37, %v1526_v1  ;;  %v1811_v7 = vmul.f32 %v386_v38, %v1528_v2  ;;  %v1819_v11 = vmul.f32 %v387_v39, %v1530_v3 }
 0x19a   : > { %424 = vrot.lane.b32.xlu0 %v1808_v6, %s1310_s21  ;;  %420 = vrot.lane.b32.xlu1 %v1805_v5, %s1310_s21  ;;  %v392_v8 = vmul.f32 %v1805_v5, %v384_v34  ;;  %v393_v15 = vmul.f32 %v1808_v6, %v385_v37  ;;  %v467_v16 = vrot.slane %v1805_v5, 1  ;;  %v469_v17 = vrot.slane %v1811_v7, 1 }
 0x19b   : > { %v394_v42 = vmul.f32 %v1811_v7, %v386_v38  ;;  %v2275_v49 = vrot.slane %v1811_v7, 2  ;;  %v2274_v51 = vrot.slane %v1805_v5, 2  ;;  %v395_v52 = vmul.f32 %v1819_v11, %v387_v39 }
 0x19c   : > { %v396_v47 = vadd.f32 %v393_v15, %v392_v8  ;;  %v474_v62 = vsel %vm471_vm10, %v469_v17, %v467_v16  ;;  %v468_v19 = vrot.slane %v1808_v6, 1  ;;  %v470_v22 = vrot.slane %v1819_v11, 1 }
 0x19d   : > { %v478_v4 = vsub.f32 %v474_v62, %v1811_v7  ;;  %v616_v24 = vsel %vm613_vm7, %v2275_v49, %v2274_v51  ;;  %v2276_v34 = vrot.slane %v1808_v6, 2  ;;  %v2277_v37 = vrot.slane %v1819_v11, 2 }
 0x19e   : > { %566 = vrot.lane.b32.xlu0 %v1808_v6, %s1311_s28  ;;  %422 = vrot.lane.b32.xlu1 %v1811_v7, %s1310_s21  ;;  %v397_v61 = vadd.f32 %v396_v47, %v394_v42  ;;  %v620_v38 = vsub.f32 %v616_v24, %v1811_v7  ;;  %v2271_v15 = vrot.slane %v1811_v7, 4  ;;  %v2272_v42 = vrot.slane %v1808_v6, 4 }
 0x19f   : > { %v494_v23 = vand.u32 2147483647, %v478_v4  ;;  %v2273_v47 = vrot.slane %v1819_v11, 4  ;;  %v617_v4 = vsel %vm613_vm7, %v2277_v37, %v2276_v34  ;;  %v485_v37 = vsel %vm471_vm10, %v481_v32, %v483_v33 }
 0x1a0   : > { %v398_v13 = vadd.f32 %v397_v61, %v395_v52  ;;  %v636_v8 = vand.u32 2147483647, %v620_v38  ;;  %v2270_v52 = vrot.slane %v1805_v5, 4  ;;  %v621_v24 = vsub.f32 %v617_v4, %v1819_v11 }
 0x1a1   : > { %v1855_v39 = vmul.f32 %v494_v23, %v1742_v25  ;;  %v475_v25 = vsel %vm471_vm10, %v470_v22, %v468_v19  ;;  %v473_v48 = vsel %vm471_vm10, %v468_v19, %v470_v22  ;;  %v1081_v19 = vsel %vm699_vm2, 1.0, %v1314_v21 }
 0x1a2   : > { %568 = vrot.lane.b32.xlu0 %v1819_v11, %s1311_s28  ;;  %426 = vrot.lane.b32.xlu1 %v1819_v11, %s1310_s21  ;;  %v1872_v61 = vmul.f32 %v636_v8, %v1744_v27  ;;  %v479_v62 = vsub.f32 %v475_v25, %v1819_v11  ;;  %v758_v23 = vsel %vm755_vm12, %v2271_v15, %v2270_v52  ;;  %v637_v8 = vand.u32 2147483647, %v621_v24  ;;  %s2316_s21 = smov 120  }
 0x1a3   : > { %v762_v27 = vsub.f32 %v758_v23, %v1811_v7  ;;  %v759_v25 = vsel %vm755_vm12, %v2273_v47, %v2272_v42  ;;  %v2045_v22 = vsel %vm841_vm3, 1.0, %v1314_v21 }
 0x1a4   : > { %v495_v38 = vand.u32 2147483647, %v479_v62  ;;  %v1903_v62 = vmul.f32 %v637_v8, %v1779_v26  ;;  %v763_v23 = vsub.f32 %v759_v25, %v1819_v11  ;;  %v545_v26 = vadd.f32 %v544_v55, %v1650_v43  ;;  %v442_v8 = vpop.permute.xlu0 %441 }
 0x1a5   : > { %v778_v52 = vand.u32 2147483647, %v762_v27 }
 0x1a6   : > { %708 = vrot.lane.b32.xlu0 %v1808_v6, %s1312_s30  ;;  %562 = vrot.lane.b32.xlu1 %v1805_v5, %s1311_s28  ;;  %v1900_v4 = vmul.f32 %v495_v38, %v1777_v41  ;;  %v779_v24 = vand.u32 2147483647, %v763_v23  ;;  %v1940_v41 = vsel %vm822_vm8, %v1528_v2, 0.0  ;;  %v438_v38 = vpop.permute.xlu1 %437  ;;  %vm935_vm8 = vcmp.eq.s32.totalorder %v1582_v45, 2 }
 0x1a7   : > { %v1907_v15 = vmul.f32 %v778_v52, %v1775_v40  ;;  %v1926_v40 = vsel %vm823_vm6, %v1530_v3, 0.0  ;;  %2319 = vst [vmem:[#allocation15_spill] sm:$0xff] %v1940_v41  ;;  %v686_v52 = vadd.f32 %v1635_v60, %v1630_v59  ;;  %v829_v23 = vadd.f32 %v828_v53, %v1940_v41 }
 0x1a8   : > { %v1914_v27 = vmul.f32 %v779_v24, %v1787_v46  ;;  %2318 = vst [vmem:[#allocation14_spill] sm:$0xff] %v1926_v40  ;;  %v546_v46 = vadd.f32 %v545_v26, %v1658_v50  ;;  %v584_v26 = vpop.permute.xlu0 %583  ;;  %v447_v36 = vsel %vm428_vm15, %v442_v8, %v438_v38  ;;  %v445_v33 = vsel %vm428_vm15, %v438_v38, %v442_v8 }
 0x1a9   : > { %v687_v18 = vadd.f32 %v686_v52, %v1696_v10  ;;  %v830_v24 = vadd.f32 %v829_v23, %v1926_v40  ;;  %v1970_v23 = vmul.f32 0.0, %v1689_v9  ;;  %vm929_vm6 = vcmp.eq.s32.totalorder %v1582_v45, 0 }
 0x1aa   : > { %710 = vrot.lane.b32.xlu0 %v1819_v11, %s1312_s30  ;;  %564 = vrot.lane.b32.xlu1 %v1811_v7, %s1311_s28  ;;  %2317 = vst [vmem:[#allocation13_spill] sm:$0xff] %v1914_v27  ;;  %v580_v55 = vpop.permute.xlu1 %579 }
 0x1ab   : > { %v688_v25 = vadd.f32 %v687_v18, %v1703_v12  ;;  %2321 = vst [vmem:[#allocation17_spill] sm:$0xff] %v1970_v23  ;;  %v2055_v9 = vsel %vm570_vm1, %v580_v55, %v584_v26 }
 0x1ac   : > { %v444_v42 = vpop.permute.xlu0 %443 }
 0x1ae   : > { %850 = vrot.lane.b32.xlu0 %v1808_v6, %s2316_s21  ;;  %704 = vrot.lane.b32.xlu1 %v1805_v5, %s1312_s30 }
 0x1b0   : > { %v726_v52 = vpop.permute.xlu0 %725 }
 0x1b2   : > { %852 = vrot.lane.b32.xlu0 %v1819_v11, %s2316_s21  ;;  %706 = vrot.lane.b32.xlu1 %v1811_v7, %s1312_s30 }
 0x1b4   : > { %v586_v49 = vpop.permute.xlu0 %585 }
 0x1b6   : > { %846 = vrot.lane.b32.xlu1 %v1805_v5, %s2316_s21  ;;  %869 = vrot.lane.b32.xlu0 %v1926_v40, %s2316_s21 }
 0x1ba   : > { %848 = vrot.lane.b32.xlu1 %v1811_v7, %s2316_s21 }
 0x1be   : > { %865 = vrot.lane.b32.xlu1 %v1940_v41, %s2316_s21 }
 0x1d5   : > { %547 = vadd.xlane.f32.xlu0 %v546_v46  ;;  %v440_v46 = vpop.permute.xlu1 %439 }
 0x1d9   : > { %v722_v47 = vpop.permute.xlu1 %721 }
 0x1dd   : > { %v582_v51 = vpop.permute.xlu1 %581 }
 0x1e1   : > { %v1956_v34 = vpop.permute.xlu1 %863 }
 0x1e2   : > { %399 = vadd.xlane.f32.xlu1 %v398_v13  ;;  %v1958_v13 = vpop.permute.xlu0 %867 }
 0x1e5   : > { %v1962_v18 = vpop.permute.xlu1 %723 }
 0x1e6   : > { %689 = vadd.xlane.f32.xlu1 %v688_v25  ;;  %v1964_v53 = vpop.permute.xlu0 %727  ;;  %v1967_v25 = vmul.f32 0.0, %v1680_v63 }
 0x1e8   : > { %2320 = vst [vmem:[#allocation16_spill] sm:$0xff] %v1967_v25 }
 0x1ea   : > { %831 = vadd.xlane.f32.xlu1 %v830_v24  ;;  %v484_v24 = vsel %vm471_vm10, %v480_v58, %v482_v20  ;;  %v1994_v58 = vsel %vm613_vm7, %v622_v56, %v624_v14  ;;  %v2005_v20 = vsel %vm613_vm7, %v623_v30, %v625_v31  ;;  %v472_v56 = vsel %vm471_vm10, %v467_v16, %v469_v17 }
 0x1eb   : > { %v2025_v14 = vsel %vm755_vm12, %v764_v28, %v766_v29  ;;  %v2322_v30 = vrot.slane %v1703_v12, 4  ;;  %v2323_v31 = vrot.slane %v1635_v60, 4  ;;  %v450_v16 = vmul.f32 %v1077_v35, %v447_v36 }
 0x1ec   : > { %v1079_v17 = vsel %vm557_vm0, 1.0, %v1314_v21  ;;  %v589_v28 = vsel %vm570_vm1, %v584_v26, %v580_v55  ;;  %v448_v29 = vsel %vm428_vm15, %v444_v42, %v440_v46  ;;  %v476_v38 = vsub.f32 %v472_v56, %v1805_v5 }
 0x1ed   : > { %v2033_v32 = vsel %vm755_vm12, %v2323_v31, %v2322_v30  ;;  %v477_v36 = vsub.f32 %v473_v48, %v1808_v6  ;;  %v2060_v12 = vmul.f32 %v1079_v17, %v589_v28  ;;  %v446_v56 = vsel %vm428_vm15, %v440_v46, %v444_v42 }
 0x1ee   : > { %v731_v48 = vsel %vm712_vm4, %v726_v52, %v722_v47  ;;  %v873_v42 = vsel %vm854_vm5, %v1958_v13, %v1956_v34  ;;  %v492_v46 = vand.u32 2147483647, %v476_v38  ;;  %v732_v38 = vsel %vm712_vm4, %v1964_v53, %v1962_v18 }
 0x1ef   : > { %v493_v41 = vand.u32 2147483647, %v477_v36  ;;  %v2088_v40 = vmul.f32 %v1081_v19, %v731_v48  ;;  %vm940_vm10 = vcmp.eq.s32.totalorder %v1582_v45, 4 }
 0x20c   : > { %v421_v30 = vpop.permute.xlu1 %420  ;;  %v425_v31 = vpop.permute.xlu0 %424 }
 0x20d   : > { %v429_v8 = vsel %vm428_vm15, %v421_v30, %v425_v31  ;;  %v431_v23 = vsel %vm428_vm15, %v425_v31, %v421_v30  ;;  %v590_v30 = vsel %vm570_vm1, %v586_v49, %v582_v51  ;;  %v452_v31 = vmul.f32 %v1077_v35, %v448_v29 }
 0x20e   : > { %v433_v21 = vsub.f32 %v429_v8, %v1805_v5  ;;  %v434_v63 = vsub.f32 %v431_v23, %v1808_v6  ;;  %v2324_v8 = vrot.slane %v1819_v11, 2  ;;  %v2325_v23 = vrot.slane %v1808_v6, 2 }
 0x20f   : > { %v2326_v35 = vrot.slane %v1811_v7, 2 }
 0x210   : > { %v453_v55 = vand.u32 2147483647, %v433_v21  ;;  %v454_v26 = vand.u32 2147483647, %v434_v63  ;;  %v423_v10 = vpop.permute.xlu1 %422  ;;  %v567_v25 = vpop.permute.xlu0 %566  ;;  %v615_v28 = vsel %vm613_vm7, %v2325_v23, %v2324_v8  ;;  %v2327_v63 = vrot.slane %v1805_v5, 2 }
 0x211   : > { %v2086_v21 = vsel %vm712_vm4, %v722_v47, %v726_v52  ;;  %v2092_v8 = vsel %vm570_vm1, %v582_v51, %v586_v49  ;;  %v2094_v23 = vmul.f32 %v1079_v17, %v590_v30  ;;  %v894_v47 = vsub.f32 %v1819_v11, %v1808_v6 }
 0x212   : > { %v614_v29 = vsel %vm613_vm7, %v2327_v63, %v2326_v35  ;;  %v457_v36 = vmul.f32 %v453_v55, %v445_v33  ;;  %v458_v27 = vmul.f32 %v454_v26, %v450_v16  ;;  %v619_v35 = vsub.f32 %v615_v28, %v1808_v6 }
 0x213   : > { %v2107_v49 = vsel %vm854_vm5, %v1956_v34, %v1958_v13  ;;  %v2110_v51 = vmul.f32 %v2045_v22, %v873_v42  ;;  %v618_v48 = vsub.f32 %v614_v29, %v1805_v5  ;;  %v496_v33 = vmul.f32 %v492_v46, %v484_v24 }
 0x214   : > { %v427_v52 = vpop.permute.xlu1 %426  ;;  %v569_v17 = vpop.permute.xlu0 %568  ;;  %v497_v16 = vmul.f32 %v493_v41, %v485_v37  ;;  %v2121_v34 = vsel %vm712_vm4, %v1962_v18, %v1964_v53  ;;  %v2123_v13 = vmul.f32 %v1081_v19, %v732_v38  ;;  %v893_v37 = vsub.f32 %v1811_v7, %v1805_v5 }
 0x215   : > { %v430_v30 = vsel %vm428_vm15, %v423_v10, %v427_v52  ;;  %v432_v55 = vsel %vm428_vm15, %v427_v52, %v423_v10  ;;  %v500_v41 = vadd.f32 %v496_v33, %v457_v36  ;;  %v635_v42 = vand.u32 2147483647, %v619_v35 }
 0x216   : > { %v435_v26 = vsub.f32 %v430_v30, %v1811_v7  ;;  %v436_v28 = vsub.f32 %v432_v55, %v1819_v11  ;;  %v501_v24 = vadd.f32 %v497_v16, %v458_v27  ;;  %v2328_v52 = vrot.slane %v1819_v11, 4 }
 0x217   : > { %v2329_v18 = vrot.slane %v1808_v6, 4  ;;  %v2330_v19 = vrot.slane %v1811_v7, 4  ;;  %v2331_v38 = vrot.slane %v1805_v5, 4  ;;  %v2141_v27 = vand.u32 2147483647, %v894_v47 }
 0x218   : > { %v455_v46 = vand.u32 2147483647, %v435_v26  ;;  %v456_v10 = vand.u32 2147483647, %v436_v28  ;;  %v563_v63 = vpop.permute.xlu1 %562  ;;  %v709_v29 = vpop.permute.xlu0 %708  ;;  %v634_v16 = vand.u32 2147483647, %v618_v48  ;;  %v504_v47 = vmul.f32 %v500_v41, %v1524_v0 }
 0x219   : > { %v757_v53 = vsel %vm755_vm12, %v2329_v18, %v2328_v52  ;;  %v756_v36 = vsel %vm755_vm12, %v2331_v38, %v2330_v19  ;;  %v571_v35 = vsel %vm570_vm1, %v563_v63, %v567_v25  ;;  %v573_v33 = vsel %vm570_vm1, %v567_v25, %v563_v63 }
 0x21a   : > { %v459_v30 = vmul.f32 %v455_v46, %v446_v56  ;;  %v460_v55 = vmul.f32 %v456_v10, %v452_v31  ;;  %v575_v26 = vsub.f32 %v571_v35, %v1805_v5  ;;  %v576_v28 = vsub.f32 %v573_v33, %v1808_v6 }
 0x21b   : > { %v761_v52 = vsub.f32 %v757_v53, %v1808_v6  ;;  %v760_v44 = vsub.f32 %v756_v36, %v1805_v5  ;;  %v505_v18 = vmul.f32 %v501_v24, %v1526_v1  ;;  %v639_v38 = vmul.f32 %v635_v42, %v2005_v20 }
 0x21c   : > { %v502_v19 = vadd.f32 %v1855_v39, %v459_v30  ;;  %v595_v25 = vand.u32 2147483647, %v575_v26  ;;  %v596_v48 = vand.u32 2147483647, %v576_v28  ;;  %v565_v56 = vpop.permute.xlu1 %564  ;;  %v638_v31 = vmul.f32 %v634_v16, %v1994_v58  ;;  %v711_v41 = vpop.permute.xlu0 %710 }
 0x21d   : > { %v572_v46 = vsel %vm570_vm1, %v565_v56, %v569_v17  ;;  %v574_v10 = vsel %vm570_vm1, %v569_v17, %v565_v56  ;;  %v503_v63 = vadd.f32 %v1900_v4, %v460_v55  ;;  %v777_v24 = vand.u32 2147483647, %v761_v52 }
 0x21e   : > { %v599_v0 = vmul.f32 %v595_v25, %v2055_v9  ;;  %v600_v1 = vmul.f32 %v596_v48, %v2060_v12  ;;  %v577_v39 = vsub.f32 %v572_v46, %v1811_v7  ;;  %v578_v20 = vsub.f32 %v574_v10, %v1819_v11 }
 0x21f   : > { %v776_v42 = vand.u32 2147483647, %v760_v44  ;;  %v506_v58 = vmul.f32 %v502_v19, %v1528_v2  ;;  %v508_v53 = vadd.f32 %v505_v18, %v504_v47  ;;  %v507_v4 = vmul.f32 %v503_v63, %v1530_v3 }
 0x220   : > { %v642_v36 = vadd.f32 %v638_v31, %v599_v0  ;;  %v643_v35 = vadd.f32 %v639_v38, %v600_v1  ;;  %v597_v33 = vand.u32 2147483647, %v577_v39  ;;  %v598_v17 = vand.u32 2147483647, %v578_v20  ;;  %v705_v16 = vpop.permute.xlu1 %704  ;;  %v851_v38 = vpop.permute.xlu0 %850 }
 0x221   : > { %v713_v9 = vsel %vm712_vm4, %v705_v16, %v709_v29  ;;  %v715_v12 = vsel %vm712_vm4, %v709_v29, %v705_v16  ;;  %v509_v30 = vadd.f32 %v508_v53, %v506_v58  ;;  %v895_v18 = vsub.f32 %v1805_v5, %v1811_v7 }
 0x222   : > { %v601_v55 = vmul.f32 %v597_v33, %v2092_v8  ;;  %v602_v26 = vmul.f32 %v598_v17, %v2094_v23  ;;  %v717_v2 = vsub.f32 %v713_v9, %v1805_v5  ;;  %v718_v28 = vsub.f32 %v715_v12, %v1808_v6  ;;  %v2332_v12 = vld [vmem:[#allocation13_spill] sm:$0xff] }
 0x223   : > { %v510_v52 = vadd.f32 %v509_v30, %v507_v4  ;;  %v646_v44 = vmul.f32 %v642_v36, %v1600_v54  ;;  %v647_v47 = vmul.f32 %v643_v35, %v1615_v57  ;;  %v781_v3 = vmul.f32 %v777_v24, %v2033_v32  ;;  %v2333_v4 = vld [vmem:[#allocation14_spill] sm:$0xff]  ;;  %v2334_v30 = vld [vmem:[#allocation15_spill] sm:$0xff] }
 0x224   : > { %v644_v29 = vadd.f32 %v1872_v61, %v601_v55  ;;  %v737_v19 = vand.u32 2147483647, %v717_v2  ;;  %v738_v8 = vand.u32 2147483647, %v718_v28  ;;  %v707_v23 = vpop.permute.xlu1 %706  ;;  %v780_v25 = vmul.f32 %v776_v42, %v2025_v14  ;;  %v853_v42 = vpop.permute.xlu0 %852 }
 0x225   : > { %v714_v48 = vsel %vm712_vm4, %v707_v23, %v711_v41  ;;  %v716_v54 = vsel %vm712_vm4, %v711_v41, %v707_v23  ;;  %511 = vadd.xlane.f32.xlu0 %v510_v52  ;;  %v645_v57 = vadd.f32 %v1903_v62, %v602_v26  ;;  %v901_v14 = vand.u32 2147483647, %v893_v37  ;;  %v2335_v52 = vld [vmem:[#allocation16_spill] sm:$0xff] }
 0x226   : > { %v741_v56 = vmul.f32 %v737_v19, %v2086_v21  ;;  %v742_v61 = vmul.f32 %v738_v8, %v2088_v40  ;;  %v719_v32 = vsub.f32 %v714_v48, %v1811_v7  ;;  %v720_v31 = vsub.f32 %v716_v54, %v1819_v11  ;;  %v2337_v23 = vld [vmem:[#allocation12_spill] sm:$0xff] }
 0x227   : > { %v648_v46 = vmul.f32 %v644_v29, %v1650_v43  ;;  %v650_v10 = vadd.f32 %v647_v47, %v646_v44  ;;  %v903_v63 = vand.u32 2147483647, %v895_v18  ;;  %v649_v41 = vmul.f32 %v645_v57, %v1658_v50  ;;  %v2336_v44 = vld [vmem:[#allocation11_spill] sm:$0xff]  ;;  %v2338_v57 = vld [vmem:[#allocation9_spill] sm:$0xff] }
 0x228   : > { %v784_v0 = vadd.f32 %v780_v25, %v741_v56  ;;  %v785_v1 = vadd.f32 %v781_v3, %v742_v61  ;;  %v739_v39 = vand.u32 2147483647, %v719_v32  ;;  %v740_v62 = vand.u32 2147483647, %v720_v31  ;;  %v847_v20 = vpop.permute.xlu1 %846  ;;  %v870_v28 = vpop.permute.xlu0 %869  ;;  %v2339_v61 = vld [vmem:[#allocation10_spill] sm:$0xff] }
 0x229   : > { %v855_v40 = vsel %vm854_vm5, %v847_v20, %v851_v38  ;;  %v857_v21 = vsel %vm854_vm5, %v851_v38, %v847_v20  ;;  %v651_v24 = vadd.f32 %v650_v10, %v648_v46  ;;  %v896_v17 = vsub.f32 %v1808_v6, %v1819_v11  ;;  %v2340_v10 = vld [vmem:[#allocation17_spill] sm:$0xff] }
 0x22a   : > { %v743_v37 = vmul.f32 %v739_v39, %v2121_v34  ;;  %v744_v43 = vmul.f32 %v740_v62, %v2123_v13  ;;  %v859_v58 = vsub.f32 %v855_v40, %v1805_v5  ;;  %v860_v53 = vsub.f32 %v857_v21, %v1808_v6 }
 0x22b   : > { %v652_v36 = vadd.f32 %v651_v24, %v649_v41  ;;  %v788_v35 = vmul.f32 %v784_v0, %v1630_v59  ;;  %v789_v33 = vmul.f32 %v785_v1, %v1635_v60  ;;  %v906_v5 = vmul.f32 %v2141_v27, %v2333_v4 }
 0x22c   : > { %v786_v50 = vadd.f32 %v1907_v15, %v743_v37  ;;  %v879_v16 = vand.u32 2147483647, %v859_v58  ;;  %v880_v9 = vand.u32 2147483647, %v860_v53  ;;  %v849_v34 = vpop.permute.xlu1 %848  ;;  %v787_v13 = vadd.f32 %v2332_v12, %v744_v43 }
 0x22d   : > { %v905_v55 = vmul.f32 %v901_v14, %v2334_v30  ;;  %v856_v59 = vsel %vm854_vm5, %v849_v34, %v853_v42  ;;  %v858_v60 = vsel %vm854_vm5, %v853_v42, %v849_v34  ;;  %653 = vadd.xlane.f32.xlu0 %v652_v36  ;;  %v907_v27 = vmul.f32 %v903_v63, %v2335_v52 }
 0x22e   : > { %v883_v6 = vmul.f32 %v879_v16, %v2107_v49  ;;  %v884_v15 = vmul.f32 %v880_v9, %v2110_v51  ;;  %v861_v26 = vsub.f32 %v856_v59, %v1811_v7  ;;  %v862_v2 = vsub.f32 %v858_v60, %v1819_v11 }
 0x22f   : > { %v790_v47 = vmul.f32 %v786_v50, %v2336_v44  ;;  %v792_v18 = vadd.f32 %v789_v33, %v788_v35  ;;  %v904_v29 = vand.u32 2147483647, %v896_v17  ;;  %v791_v25 = vmul.f32 %v787_v13, %v2337_v23 }
 0x230   : > { %v909_v3 = vadd.f32 %v905_v55, %v883_v6  ;;  %v910_v19 = vadd.f32 %v906_v5, %v884_v15  ;;  %v881_v8 = vand.u32 2147483647, %v861_v26  ;;  %v866_v38 = vpop.permute.xlu1 %865  ;;  %v882_v49 = vand.u32 2147483647, %v862_v2 }
 0x231   : > { %v872_v51 = vsel %vm854_vm5, %v866_v38, %v870_v28  ;;  %v874_v7 = vsel %vm854_vm5, %v870_v28, %v866_v38  ;;  %v793_v11 = vadd.f32 %v792_v18, %v790_v47  ;;  %v908_v63 = vmul.f32 %v904_v29, %v2340_v10 }
 0x232   : > { %v878_v48 = vmul.f32 %v2045_v22, %v874_v7  ;;  %v885_v54 = vmul.f32 %v881_v8, %v872_v51  ;;  %v913_v56 = vmul.f32 %v909_v3, %v2338_v57  ;;  %v914_v32 = vmul.f32 %v910_v19, %v2339_v61 }
 0x233   : > { %v794_v31 = vadd.f32 %v793_v11, %v791_v25  ;;  %vm932_vm7 = vcmp.eq.s32.totalorder %v1582_v45, 1  ;;  %vm946_vm12 = vcmp.eq.s32.totalorder %v1582_v45, 6  ;;  %vm955_vm15 = vcmp.eq.s32.totalorder %v1582_v45, 9 }
 0x234   : > { %v886_v14 = vmul.f32 %v882_v49, %v878_v48  ;;  %v911_v46 = vadd.f32 %v907_v27, %v885_v54  ;;  %v917_v39 = vadd.f32 %v914_v32, %v913_v56 }
 0x235   : > { %795 = vadd.xlane.f32.xlu0 %v794_v31 }
 0x236   : > { %v912_v0 = vadd.f32 %v908_v63, %v886_v14  ;;  %v915_v1 = vmul.f32 %v911_v46, %v2334_v30 }
 0x238   : > { %v916_v62 = vmul.f32 %v912_v0, %v2333_v4  ;;  %v918_v20 = vadd.f32 %v917_v39, %v915_v1  ;;  %v933_v39 = vstv %s1789_s11 }
 0x23a   : > { %v919_v40 = vadd.f32 %v918_v20, %v916_v62 }
 0x23c   : > { %920 = vadd.xlane.f32.xlu0 %v919_v40 }
 0x262   : > { %v548_v58 = vpop.xlane.xlu0 %547 }
 0x263   : > { %v549_v53 = vrot.slane %v548_v58, 4 }
 0x265   : > { %v550_v36 = vadd.f32 %v549_v53, %v548_v58 }
 0x267   : > { %v551_v33 = vrot.slane %v550_v36, 2 }
 0x269   : > { %v552_v34 = vadd.f32 %v551_v33, %v550_v36 }
 0x26b   : > { %v553_v30 = vrot.slane %v552_v34, 1 }
 0x26d   : > { %v554_v26 = vadd.f32 %v553_v30, %v552_v34 }
 0x26f   : > { %v400_v22 = vpop.xlane.xlu1 %399 }
 0x270   : > { %v401_v21 = vrot.slane %v400_v22, 4 }
 0x272   : > { %v402_v41 = vadd.f32 %v401_v21, %v400_v22 }
 0x273   : > { %v690_v35 = vpop.xlane.xlu1 %689 }
 0x274   : > { %v403_v24 = vrot.slane %v402_v41, 2  ;;  %v691_v17 = vrot.slane %v690_v35, 4 }
 0x276   : > { %v404_v37 = vadd.f32 %v403_v24, %v402_v41  ;;  %v692_v9 = vadd.f32 %v691_v17, %v690_v35 }
 0x277   : > { %v832_v13 = vpop.xlane.xlu1 %831 }
 0x278   : > { %v405_v43 = vrot.slane %v404_v37, 1  ;;  %v693_v5 = vrot.slane %v692_v9, 2  ;;  %v833_v55 = vrot.slane %v832_v13, 4 }
 0x27a   : > { %v406_v42 = vadd.f32 %v405_v43, %v404_v37  ;;  %v834_v2 = vadd.f32 %v833_v55, %v832_v13  ;;  %v694_v28 = vadd.f32 %v693_v5, %v692_v9 }
 0x27c   : > { %1101 = vpush %v406_v42  ;;  %v835_v47 = vrot.slane %v834_v2, 2  ;;  %v695_v18 = vrot.slane %v694_v28, 1 }
 0x27e   : > { %v836_v38 = vadd.f32 %v835_v47, %v834_v2  ;;  %v696_v23 = vadd.f32 %v695_v18, %v694_v28 }
 0x280   : > { %v837_v7 = vrot.slane %v836_v38, 1 }
 0x282   : > { %v838_v61 = vadd.f32 %v837_v7, %v836_v38 }
 0x2ad   : > { %s1102_s28 = spop %1101 }
 0x2ae   : > { %v930_v63 = vstv %s1102_s28 }
 0x2af   : > { %v931_v0 = vsel %vm929_vm6, %v930_v63, 0.0 }
 0x2b0   : > { %v934_v62 = vsel %vm932_vm7, %v933_v39, %v931_v0 }
 0x2b2   : > { %v512_v50 = vpop.xlane.xlu0 %511 }
 0x2b3   : > { %v513_v16 = vrot.slane %v512_v50, 4 }
 0x2b5   : > { %v514_v12 = vadd.f32 %v513_v16, %v512_v50 }
 0x2b7   : > { %v515_v4 = vrot.slane %v514_v12, 2 }
 0x2b9   : > { %v516_v59 = vadd.f32 %v515_v4, %v514_v12 }
 0x2ba   : > { %v654_v60 = vpop.xlane.xlu0 %653 }
 0x2bb   : > { %v655_v6 = vrot.slane %v654_v60, 4  ;;  %v517_v15 = vrot.slane %v516_v59, 1 }
 0x2bd   : > { %v656_v52 = vadd.f32 %v655_v6, %v654_v60  ;;  %v518_v27 = vadd.f32 %v517_v15, %v516_v59 }
 0x2bf   : > { %v657_v44 = vrot.slane %v656_v52, 2  ;;  %1103 = vpush %v518_v27 }
 0x2c0   : > { %1105 = vpush %v554_v26 }
 0x2c1   : > { %v658_v29 = vadd.f32 %v657_v44, %v656_v52 }
 0x2c2   : > { %v796_v3 = vpop.xlane.xlu0 %795 }
 0x2c3   : > { %v797_v19 = vrot.slane %v796_v3, 4  ;;  %v659_v8 = vrot.slane %v658_v29, 1 }
 0x2c5   : > { %v798_v25 = vadd.f32 %v797_v19, %v796_v3  ;;  %v660_v49 = vadd.f32 %v659_v8, %v658_v29 }
 0x2c7   : > { %v799_v51 = vrot.slane %v798_v25, 2  ;;  %1107 = vpush %v660_v49 }
 0x2c8   : > { %1109 = vpush %v696_v23 }
 0x2c9   : > { %v921_v11 = vpop.xlane.xlu0 %920  ;;  %v800_v48 = vadd.f32 %v799_v51, %v798_v25 }
 0x2ca   : > { %v922_v54 = vrot.slane %v921_v11, 4 }
 0x2cb   : > { %v801_v57 = vrot.slane %v800_v48, 1 }
 0x2cc   : > { %v923_v56 = vadd.f32 %v922_v54, %v921_v11 }
 0x2cd   : > { %v802_v32 = vadd.f32 %v801_v57, %v800_v48 }
 0x2ce   : > { %v924_v31 = vrot.slane %v923_v56, 2 }
 0x2cf   : > { %1111 = vpush %v802_v32 }
 0x2d0   : > { %v925_v14 = vadd.f32 %v924_v31, %v923_v56  ;;  %1113 = vpush %v838_v61 }
 0x2d2   : > { %v926_v46 = vrot.slane %v925_v14, 1 }
 0x2d4   : > { %v927_v10 = vadd.f32 %v926_v46, %v925_v14 }
 0x2d6   : > { %1115 = vpush %v927_v10 }
 0x2f0   : > { %s1104_s30 = spop %1103 }
 0x2f1   : > { %v936_v1 = vstv %s1104_s30  ;;  %s1106_s6 = spop %1105 }
 0x2f2   : > { %v937_v20 = vsel %vm935_vm8, %v936_v1, %v934_v62  ;;  %v944_v24 = vstv %s1106_s6 }
 0x2f3   : > { %v939_v22 = vsel %vm938_vm9, %v933_v39, %v937_v20 }
 0x2f8   : > { %s1108_s15 = spop %1107 }
 0x2f9   : > { %v941_v40 = vstv %s1108_s15  ;;  %s1110_s26 = spop %1109 }
 0x2fa   : > { %v942_v21 = vsel %vm940_vm10, %v941_v40, %v939_v22  ;;  %v950_v42 = vstv %s1110_s26 }
 0x2fb   : > { %v945_v37 = vsel %vm943_vm11, %v944_v24, %v942_v21 }
 0x300   : > { %s1112_s9 = spop %1111 }
 0x301   : > { %v947_v41 = vstv %s1112_s9  ;;  %s1114_s11 = spop %1113 }
 0x302   : > { %v948_v43 = vsel %vm946_vm12, %v947_v41, %v945_v37  ;;  %v956_v36 = vstv %s1114_s11 }
 0x303   : > { %v951_v58 = vsel %vm949_vm13, %v950_v42, %v948_v43 }
 0x307   : > { %s1116_s22 = spop %1115 }
 0x308   : > { %v953_v53 = vstv %s1116_s22 }
 0x309   : > { %v954_v35 = vsel %vm952_vm14, %v953_v53, %v951_v58 }
 0x30a   : > { %v957_v33 = vsel %vm955_vm15, %v956_v36, %v954_v35 }
 0x30b   : > { %958 = vst [vmem:[%s263_s10] sm:$0x1] %v957_v33 }
 0x30c PF: > { %p16_p7 = scmp.ge.s32.totalorder %s1357_s17, 4   ;;  %s2341_s12 = smov %s1295_s13 }
 0x30d   : > { %s2342_s13 = smov %s1299_s14  ;;  %s2343_s14 = smov %s1367_s20 }
 0x30e   : > { %s2344_s15 = smov %s1357_s17  ;;  %18 = sbr.rel (!%p16_p7) target bundleno = 5 (0x5), region = 96 }
 0x315   :  { %976 = vsyncpa [#allocation3], 1 }
 0x316   :  { %978 = vsyncpa [#allocation3 + $0x1], 1 }
 0x317   :  { %979 = vsyncpa [#allocation5], 1 }
 0x318   :  { %981 = vsyncpa [#allocation5 + $0x1], 1 }

</bundles_post_ra>
